<compile_context>
chip_gen: v5e
topology: v5e:2x2
jax: 0.10.0
libtpu: 0.0.40
codegen_flags: <defaults>
</compile_context>

<pallas_src>
import functools

import jax
import jax.numpy as jnp
from jax.experimental import pallas as pl
from jax.experimental.pallas import tpu as pltpu

NEG_SLOPE = 0.2               # LeakyReLU slope used by MLP()


# --------------------------------------------------------------------------
# Per-generation VMEM / tiling policy
# --------------------------------------------------------------------------
def _vmem_capacity():
    try:
        info = pltpu.get_tpu_info()
        cap = getattr(info, "vmem_capacity_bytes", None)
        if cap:
            return int(cap)
    except Exception:
        pass
    return 64 * 1024 * 1024   # conservative default (v7x-sized VMEM)


_VMEM_CAP = _vmem_capacity()
_BIG_VMEM = _VMEM_CAP >= (100 * 1024 * 1024)          # v5e / v6e (128 MiB)
_VMEM_LIMIT = (96 * 1024 * 1024) if _BIG_VMEM else (48 * 1024 * 1024)


def _default_tq(n):
    if _BIG_VMEM:                       # 128 MiB VMEM: bigger tiles
        return 512 if n <= 4096 else 256
    return 256 if n <= 4096 else 128    # 64 MiB VMEM (v7x): keep headroom


def _pick_chunk(k):
    """Neighbors processed per gather matmul (VMEM cost ~ chunk*TQ*N*2 B)."""
    max_chunk = 4 if _BIG_VMEM else 2
    c = max(1, min(k, max_chunk))
    while k % c:
        c -= 1
    return max(c, 1)


def _round_up(x, m):
    return ((x + m - 1) // m) * m


def _tile_and_pad(n, target):
    """Query-tile size and padded point count (tile divides padded N)."""
    if n <= target:
        tq = _round_up(n, 8)
        return tq, tq
    return target, _round_up(n, target)


def _leaky(x):
    return jnp.where(x > 0, x, NEG_SLOPE * x)


# --------------------------------------------------------------------------
# DEConv core: kNN + edge-feature MLP + max over k neighbors (per query tile)
# --------------------------------------------------------------------------
def _deconv_core(x_q, x_all, w1a, w1d, b1, w2_bf, b2, *, k, n_valid, chunk):
    """x_q: [TQ, C] query rows (sublane-aligned slice of x_all),
    x_all: [N, C] all candidate points (columns >= n_valid are padding).
    Self is included as a neighbor, matching knn_points(p1=x, p2=x)."""
    tq = x_q.shape[0]
    n = x_all.shape[0]
    out_dim = w2_bf.shape[1]

    # Pairwise squared distances, kept in f32 (cancellation-sensitive; the
    # K=C matmul is tiny relative to the neighbor-gather work below).
    sq_q = jnp.sum(x_q * x_q, axis=-1, keepdims=True)                 # [TQ, 1]
    sq_a = jnp.sum(x_all * x_all, axis=-1, keepdims=True)             # [N, 1]
    cross = jax.lax.dot_general(x_q, x_all, (((1,), (1,)), ((), ())),
                                preferred_element_type=jnp.float32)   # [TQ, N]
    d = jnp.maximum(sq_q + jnp.transpose(sq_a) - 2.0 * cross, 0.0)

    np2 = 1
    while np2 < n:
        np2 *= 2
    col = jax.lax.broadcasted_iota(jnp.int32, (tq, n), 1)
    if n_valid < n:                      # static mask of padded columns
        d = jnp.where(col < n_valid, d, 3.0e38)

    # Packed argmin key: monotone int32 view of the non-negative f32 distance
    # in the high bits, column index in the low bits.  One lane min-reduce per
    # neighbor yields both the ordering and an exact one-hot selector (ties
    # broken by lowest index).  Masking the sign bit makes -0.0 harmless.
    key = jax.lax.bitcast_convert_type(d, jnp.int32)
    packed = (key & (0x7FFFFFFF & ~(np2 - 1))) | col

    # Neighbor-independent precompute, hoisted out of the neighbor loop.
    # TODO(synk): xw1a could be computed once per batch (persistent scratch)
    # instead of once per tile; the recompute is <1% of the gather matmul work.
    xw1a_bf = jnp.dot(x_all, w1a,
                      preferred_element_type=jnp.float32).astype(jnp.bfloat16)
    hbias = jnp.dot(x_q, w1d, preferred_element_type=jnp.float32) + b1
    hbias_rows = jnp.concatenate([hbias] * chunk, axis=0)        # [chunk*TQ, H]

    def chunk_step(packed):
        # Extract `chunk` one-hot selectors sequentially (VPU/XLU), then batch
        # them into a single MXU gather matmul with chunk*TQ rows.
        sels = []
        for _ in range(chunk):
            mp = jnp.min(packed, axis=-1, keepdims=True)   # one XLU reduce
            sel = packed == mp                             # exact one-hot row
            sels.append(sel.astype(jnp.bfloat16))
            packed = jnp.where(sel, 0x7FFFFFFF, packed)    # exclude selected
        sel_rows = jnp.concatenate(sels, axis=0)           # [chunk*TQ, N] bf16
        h = jnp.dot(sel_rows, xw1a_bf,
                    preferred_element_type=jnp.float32) + hbias_rows
        h = _leaky(h)
        y = jnp.dot(h.astype(jnp.bfloat16), w2_bf,
                    preferred_element_type=jnp.float32) + b2
        y = _leaky(y)                                      # [chunk*TQ, O]
        y_max = y[:tq]
        for c in range(1, chunk):
            y_max = jnp.maximum(y_max, y[c * tq:(c + 1) * tq])
        return packed, y_max

    n_chunks = k // chunk                 # wrapper guarantees chunk | k
    packed, acc = chunk_step(packed)      # first chunk initialises the max
    if n_chunks <= 5:                     # short: full unroll (LLO visibility)
        for _ in range(n_chunks - 1):
            packed, y = chunk_step(packed)
            acc = jnp.maximum(acc, y)
    else:                                 # long: bounded code size / live set
        def body(_, st):
            pk, ac = st
            pk, y = chunk_step(pk)
            return pk, jnp.maximum(ac, y)
        packed, acc = jax.lax.fori_loop(0, n_chunks - 1, body, (packed, acc),
                                        unroll=2)
    return acc


# --------------------------------------------------------------------------
# Fused main-stack layer: DEConv + Linear/ReLU/Linear + residual transform
# --------------------------------------------------------------------------
def _deconv_layer_kernel(xall_ref, w1a_ref, w1d_ref, b1_ref, w2_ref, b2_ref,
                         lw1_ref, lb1_ref, lw2_ref, lb2_ref, tw_ref, tb_ref,
                         o_ref, *, k, n_valid, tq, chunk):
    # Query tile is a sublane-aligned slice of the resident x_all block.
    start = pl.multiple_of(pl.program_id(1) * tq, tq)
    x_all = xall_ref[...]
    x_q = xall_ref[pl.ds(start, tq), :]

    acc = _deconv_core(x_q, x_all, w1a_ref[...], w1d_ref[...], b1_ref[...],
                       w2_ref[...], b2_ref[...], k=k, n_valid=n_valid,
                       chunk=chunk)
    # linear_layers[i]: Linear(O,O) -> ReLU -> Linear(O,O) on the DEConv output.
    h = jnp.dot(acc.astype(jnp.bfloat16), lw1_ref[...],
                preferred_element_type=jnp.float32) + lb1_ref[...]
    h = jnp.maximum(h, 0.0)
    x_i = jnp.dot(h.astype(jnp.bfloat16), lw2_ref[...],
                  preferred_element_type=jnp.float32) + lb2_ref[...]
    # linear_transform[i] applied to the layer input + residual, all in VMEM.
    res = jnp.dot(x_q.astype(jnp.bfloat16), tw_ref[...],
                  preferred_element_type=jnp.float32) + tb_ref[...]
    # TODO(synk): O(=16)-lane output -> masked vst; only repack to a lane-dense
    # layout if a bundle dump shows the store slot binding.
    o_ref[...] = res + x_i


def deconv_layer(x, conv_p, ll_p, lt_p, *, k, tq, n_valid, chunk, vmem_limit):
    B, N, C = x.shape
    H = conv_p["w1a"].shape[1]
    O = conv_p["w2"].shape[1]

    w1d = conv_p["w1b"] - conv_p["w1a"]
    w2_bf = conv_p["w2"].astype(jnp.bfloat16)
    lw1_bf = ll_p["w1"].astype(jnp.bfloat16)
    lw2_bf = ll_p["w2"].astype(jnp.bfloat16)
    tw_bf = lt_p["w"].astype(jnp.bfloat16)

    def wspec(shape):
        return pl.BlockSpec(shape, lambda b, j: (0, 0))

    kernel = functools.partial(_deconv_layer_kernel, k=k, n_valid=n_valid,
                               tq=tq, chunk=chunk)
    return pl.pallas_call(
        kernel,
        out_shape=jax.ShapeDtypeStruct((B, N, O), jnp.float32),
        grid=(B, N // tq),
        in_specs=[
            pl.BlockSpec((None, N, C), lambda b, j: (b, 0, 0)),   # all points
            wspec((C, H)), wspec((C, H)), wspec((1, H)),          # conv L1
            wspec((H, O)), wspec((1, O)),                         # conv L2
            wspec((O, O)), wspec((1, O)),                         # linear 1
            wspec((O, O)), wspec((1, O)),                         # linear 2
            wspec((C, O)), wspec((1, O)),                         # transform
        ],
        out_specs=pl.BlockSpec((None, tq, O), lambda b, j: (b, j, 0)),
        compiler_params=pltpu.CompilerParams(
            dimension_semantics=("parallel", "parallel"),
            vmem_limit_bytes=vmem_limit),
    )(x, conv_p["w1a"], w1d, conv_p["b1"], w2_bf, conv_p["b2"],
      lw1_bf, ll_p["b1"], lw2_bf, ll_p["b2"], tw_bf, lt_p["b"])


# --------------------------------------------------------------------------
# Fused TNet trunk: transform_1 DEConv + transform_2 Linear/LeakyReLU + max-N
# --------------------------------------------------------------------------
def _tnet_kernel(xall_ref, w1a_ref, w1d_ref, b1_ref, w2_ref, b2_ref,
                 t2w_ref, t2b_ref, o_ref, *, k, n_valid, tq, chunk):
    j = pl.program_id(1)
    start = pl.multiple_of(j * tq, tq)
    x_all = xall_ref[...]
    x_q = xall_ref[pl.ds(start, tq), :]

    feat = _deconv_core(x_q, x_all, w1a_ref[...], w1d_ref[...], b1_ref[...],
                        w2_ref[...], b2_ref[...], k=k, n_valid=n_valid,
                        chunk=chunk)                               # [TQ, 128]
    y = jnp.dot(feat.astype(jnp.bfloat16), t2w_ref[...],
                preferred_element_type=jnp.float32) + t2b_ref[...]
    y = _leaky(y)                                                  # [TQ, 1024]
    if n_valid < xall_ref.shape[0]:      # static: mask padded rows out of max
        row = start + jax.lax.broadcasted_iota(jnp.int32, y.shape, 0)
        y = jnp.where(row < n_valid, y, -3.0e38)
    tile_max = jnp.max(y, axis=0, keepdims=True)                   # [1, 1024]

    @pl.when(j == 0)
    def _():
        o_ref[...] = tile_max

    @pl.when(j > 0)
    def _():
        o_ref[...] = jnp.maximum(o_ref[...], tile_max)


def tnet_embed(pos, p, t2_w, t2_b, *, k, tq, n_valid, chunk, vmem_limit):
    """DEConv(MLP([6,64,128])) + MLP([128,1024]) + max over points, fused so
    the [B, N, 128] intermediate never hits HBM."""
    B, N, C = pos.shape
    H = p["w1a"].shape[1]
    O = p["w2"].shape[1]
    Ct = t2_w.shape[1]

    w1d = p["w1b"] - p["w1a"]
    w2_bf = p["w2"].astype(jnp.bfloat16)
    t2w_bf = t2_w.astype(jnp.bfloat16)

    def wspec(shape):
        return pl.BlockSpec(shape, lambda b, j: (0, 0))

    kernel = functools.partial(_tnet_kernel, k=k, n_valid=n_valid, tq=tq,
                               chunk=chunk)
    out = pl.pallas_call(
        kernel,
        out_shape=jax.ShapeDtypeStruct((B, 1, Ct), jnp.float32),
        grid=(B, N // tq),
        in_specs=[
            pl.BlockSpec((None, N, C), lambda b, j: (b, 0, 0)),
            wspec((C, H)), wspec((C, H)), wspec((1, H)),
            wspec((H, O)), wspec((1, O)),
            wspec((O, Ct)), wspec((1, Ct)),
        ],
        out_specs=pl.BlockSpec((None, 1, Ct), lambda b, j: (b, 0, 0)),
        compiler_params=pltpu.CompilerParams(
            dimension_semantics=("parallel", "arbitrary"),  # j is a reduction
            vmem_limit_bytes=vmem_limit),
    )(pos, p["w1a"], w1d, p["b1"], w2_bf, p["b2"], t2w_bf, t2_b)
    return out[:, 0, :]


def _tnet_head_kernel(x_ref, w3a_ref, b3a_ref, w3b_ref, b3b_ref, w4_ref,
                      b4_ref, o_ref):
    h = _leaky(jnp.dot(x_ref[...].astype(jnp.bfloat16), w3a_ref[...],
                       preferred_element_type=jnp.float32) + b3a_ref[...])
    h = _leaky(jnp.dot(h.astype(jnp.bfloat16), w3b_ref[...],
                       preferred_element_type=jnp.float32) + b3b_ref[...])
    o_ref[...] = jnp.dot(h.astype(jnp.bfloat16), w4_ref[...],
                         preferred_element_type=jnp.float32) + b4_ref[...]


def tnet_head(x, params):
    """transform_3 (1024->512->256, LeakyReLU) + transform_4 (256->9), fused."""
    B = x.shape[0]
    return pl.pallas_call(
        _tnet_head_kernel,
        out_shape=jax.ShapeDtypeStruct((B, 9), jnp.float32),
    )(x, params["t3a_w"].astype(jnp.bfloat16), params["t3a_b"],
      params["t3b_w"].astype(jnp.bfloat16), params["t3b_b"],
      params["t4_w"].astype(jnp.bfloat16), params["t4_b"])


# --------------------------------------------------------------------------
# Parameters (deterministic in-script init; shapes from DGCNN_seg.__init__)
# --------------------------------------------------------------------------
def _lin_params(key, cin, cout):
    kw, kb = jax.random.split(key)
    w = jax.random.normal(kw, (cin, cout), jnp.float32) / jnp.sqrt(float(cin))
    b = jax.random.normal(kb, (1, cout), jnp.float32) * 0.01
    return w, b


def _deconv_params(key, cin, hidden, cout):
    # MLP([2*cin, hidden, cout]); the first-layer weight is split into the
    # halves acting on (x_j - x_i) and on x_i respectively.
    k1, k2, k3 = jax.random.split(key, 3)
    w1a, _ = _lin_params(k1, cin, hidden)
    w1b, b1 = _lin_params(k2, cin, hidden)
    w2, b2 = _lin_params(k3, hidden, cout)
    return dict(w1a=w1a, w1b=w1b, b1=b1, w2=w2, b2=b2)


def init_params(key, in_channels, out_channels, n_layers):
    I = in_channels + 3
    O = out_channels
    keys = jax.random.split(key, 5 + 3 * n_layers)
    params = {}
    # TNet
    params["t1"] = _deconv_params(keys[0], 3, 64, 128)          # MLP([6,64,128])
    params["t2_w"], params["t2_b"] = _lin_params(keys[1], 128, 1024)
    params["t3a_w"], params["t3a_b"] = _lin_params(keys[2], 1024, 512)
    params["t3b_w"], params["t3b_b"] = _lin_params(keys[3], 512, 256)
    params["t4_w"], params["t4_b"] = _lin_params(keys[4], 256, 9)
    # main stack
    params["conv"], params["ll"], params["lt"] = [], [], []
    cin = I
    for i in range(n_layers):
        params["conv"].append(_deconv_params(keys[5 + 3 * i], cin, O, O))
        ka, kb = jax.random.split(keys[6 + 3 * i])
        w1, b1 = _lin_params(ka, O, O)
        w2, b2 = _lin_params(kb, O, O)
        params["ll"].append(dict(w1=w1, b1=b1, w2=w2, b2=b2))
        wt, bt = _lin_params(keys[7 + 3 * i], cin, O)
        params["lt"].append(dict(w=wt, b=bt))
        cin = O
    return params


# --------------------------------------------------------------------------
# Forward pass (mirrors DGCNN_seg.forward with use_TNet=True)
# --------------------------------------------------------------------------
def dgcnn_seg_forward(params, positions, features, *, n_layers, k):
    B, N, _ = positions.shape
    assert k <= N, "k must not exceed the number of points"

    tq, n_pad = _tile_and_pad(N, _default_tq(N))
    chunk = _pick_chunk(k)
    if n_pad != N:
        # Pad the point axis so tiles divide evenly; padded columns are
        # statically masked out of the kNN inside the kernels and padded rows
        # are sliced off at the end.
        pad = ((0, 0), (0, n_pad - N), (0, 0))
        positions = jnp.pad(positions, pad)
        features = jnp.pad(features, pad)

    # ---- TNet ----
    g = tnet_embed(positions, params["t1"], params["t2_w"], params["t2_b"],
                   k=k, tq=tq, n_valid=N, chunk=chunk,
                   vmem_limit=_VMEM_LIMIT)                        # [B, 1024]
    t = tnet_head(g, params).reshape(B, 3, 3)                     # [B, 3, 3]
    # The 3x3 point transform + concat are tiny, lane-sparse ops: keep them as
    # plain XLA instead of a dedicated K=3 Pallas matmul.
    x0 = jnp.einsum("nki,nij->nkj", positions, t)                 # [B, Np, 3]
    x = jnp.concatenate([x0, features], axis=-1)                  # [B, Np, I]

    # ---- main stack: DEConv + point-MLP + residual fused per layer ----
    for i in range(n_layers):
        x = deconv_layer(x, params["conv"][i], params["ll"][i],
                         params["lt"][i], k=k, tq=tq, n_valid=N, chunk=chunk,
                         vmem_limit=_VMEM_LIMIT)
    return x[:, :N, :]


if __name__ == "__main__":
    key = jax.random.PRNGKey(0)
    kp, kpos, kfeat = jax.random.split(key, 3)

    B, N = 2, 16
    in_channels, out_channels, n_layers, knn_k = 5, 16, 2, 4

    positions = jax.random.normal(kpos, (B, N, 3), jnp.float32)
    features = jax.random.normal(kfeat, (B, N, in_channels), jnp.float32)
    params = init_params(kp, in_channels, out_channels, n_layers)

    out = dgcnn_seg_forward(params, positions, features,
                            n_layers=n_layers, k=knn_k)
    out = jax.block_until_ready(out)
    assert out.shape == (B, N, out_channels), out.shape
    assert bool(jnp.all(jnp.isfinite(out)))
    print("KERNEL_OK")
</pallas_src>

<mosaic_0001>
module attributes {stable_mosaic.version = 11 : i64} {
  func.func @_tnet_kernel(%arg0: i32, %arg1: i32, %arg2: memref<1x16x3xf32, #tpu.memory_space<vmem>>, %arg3: memref<3x64xf32, #tpu.memory_space<vmem>>, %arg4: memref<3x64xf32, #tpu.memory_space<vmem>>, %arg5: memref<1x64xf32, #tpu.memory_space<vmem>>, %arg6: memref<64x128xbf16, #tpu.memory_space<vmem>>, %arg7: memref<1x128xf32, #tpu.memory_space<vmem>>, %arg8: memref<128x1024xbf16, #tpu.memory_space<vmem>>, %arg9: memref<1x1024xf32, #tpu.memory_space<vmem>>, %arg10: memref<1x1x1024xf32, #tpu.memory_space<vmem>>) attributes {dimension_semantics = [#tpu.dimension_semantics<parallel>, #tpu.dimension_semantics<arbitrary>], iteration_bounds = array<i64: 2, 1>, scalar_prefetch = 0 : i64, scratch_operands = 0 : i64, tpu.core_type = #tpu.core_type<tc>, window_params = [{transform_indices = @transform_0, window_bounds = array<i64: 1, 16, 3>}, {pipeline_mode = #tpu.pipeline_mode<synchronous>, transform_indices = @transform_1, window_bounds = array<i64: 3, 64>}, {pipeline_mode = #tpu.pipeline_mode<synchronous>, transform_indices = @transform_2, window_bounds = array<i64: 3, 64>}, {pipeline_mode = #tpu.pipeline_mode<synchronous>, transform_indices = @transform_3, window_bounds = array<i64: 1, 64>}, {pipeline_mode = #tpu.pipeline_mode<synchronous>, transform_indices = @transform_4, window_bounds = array<i64: 64, 128>}, {pipeline_mode = #tpu.pipeline_mode<synchronous>, transform_indices = @transform_5, window_bounds = array<i64: 1, 128>}, {pipeline_mode = #tpu.pipeline_mode<synchronous>, transform_indices = @transform_6, window_bounds = array<i64: 128, 1024>}, {pipeline_mode = #tpu.pipeline_mode<synchronous>, transform_indices = @transform_7, window_bounds = array<i64: 1, 1024>}, {transform_indices = @transform_8, window_bounds = array<i64: 1, 1, 1024>}]} {
    %c16_i32 = arith.constant 16 : i32
    %0 = arith.muli %arg1, %c16_i32 : i32
    %1 = tpu.assume_multiple %0, 16 : i32
    %c0 = arith.constant 0 : index
    %c0_0 = arith.constant 0 : index
    %c0_1 = arith.constant 0 : index
    %2 = vector.load %arg2[%c0, %c0_0, %c0_1] : memref<1x16x3xf32, #tpu.memory_space<vmem>>, vector<1x16x3xf32>
    %3 = vector.shape_cast %2 : vector<1x16x3xf32> to vector<16x3xf32>
    %c0_2 = arith.constant 0 : index
    %4 = arith.index_cast %1 : i32 to index
    %c0_3 = arith.constant 0 : index
    %5 = vector.load %arg2[%c0_2, %4, %c0_3] : memref<1x16x3xf32, #tpu.memory_space<vmem>>, vector<1x16x3xf32>
    %6 = vector.shape_cast %5 : vector<1x16x3xf32> to vector<16x3xf32>
    %c0_4 = arith.constant 0 : index
    %c0_5 = arith.constant 0 : index
    %7 = vector.load %arg3[%c0_4, %c0_5] : memref<3x64xf32, #tpu.memory_space<vmem>>, vector<3x64xf32>
    %c0_6 = arith.constant 0 : index
    %c0_7 = arith.constant 0 : index
    %8 = vector.load %arg4[%c0_6, %c0_7] : memref<3x64xf32, #tpu.memory_space<vmem>>, vector<3x64xf32>
    %c0_8 = arith.constant 0 : index
    %c0_9 = arith.constant 0 : index
    %9 = vector.load %arg5[%c0_8, %c0_9] : memref<1x64xf32, #tpu.memory_space<vmem>>, vector<1x64xf32>
    %c0_10 = arith.constant 0 : index
    %c0_11 = arith.constant 0 : index
    %10 = vector.load %arg6[%c0_10, %c0_11] : memref<64x128xbf16, #tpu.memory_space<vmem>>, vector<64x128xbf16>
    %c0_12 = arith.constant 0 : index
    %c0_13 = arith.constant 0 : index
    %11 = vector.load %arg7[%c0_12, %c0_13] : memref<1x128xf32, #tpu.memory_space<vmem>>, vector<1x128xf32>
    %12 = arith.mulf %6, %6 : vector<16x3xf32>
    %cst = arith.constant dense<0.000000e+00> : vector<16xf32>
    %13 = vector.multi_reduction <add>, %12, %cst [1] : vector<16x3xf32> to vector<16xf32>
    %14 = vector.shape_cast %13 : vector<16xf32> to vector<16x1xf32>
    %15 = arith.mulf %3, %3 : vector<16x3xf32>
    %cst_14 = arith.constant dense<0.000000e+00> : vector<16xf32>
    %16 = vector.multi_reduction <add>, %15, %cst_14 [1] : vector<16x3xf32> to vector<16xf32>
    %17 = vector.shape_cast %16 : vector<16xf32> to vector<16x1xf32>
    %cst_15 = arith.constant dense<0.000000e+00> : vector<16x16xf32>
    %18 = tpu.matmul %6, %3, %cst_15 {dimension_numbers = #tpu.dot_dimension_numbers<[1], [1], [0], [0], [0, 0, 1, 0], [], []>} : vector<16x3xf32>, vector<16x3xf32>, vector<16x16xf32> -> vector<16x16xf32>
    %19 = tpu.transpose %17, [1, 0] : vector<16x1xf32> -> vector<1x16xf32>
    %20 = vector.broadcast %14 : vector<16x1xf32> to vector<16x16xf32>
    %21 = vector.broadcast %19 : vector<1x16xf32> to vector<16x16xf32>
    %22 = arith.addf %20, %21 : vector<16x16xf32>
    %cst_16 = arith.constant 2.000000e+00 : f32
    %23 = vector.broadcast %cst_16 : f32 to vector<16x16xf32>
    %24 = arith.mulf %23, %18 : vector<16x16xf32>
    %25 = arith.subf %22, %24 : vector<16x16xf32>
    %cst_17 = arith.constant 0.000000e+00 : f32
    %26 = vector.broadcast %cst_17 : f32 to vector<16x16xf32>
    %27 = arith.maximumf %25, %26 : vector<16x16xf32>
    %28 = tpu.iota {dimensions = array<i32: 1>} : vector<16x16xi32>
    %29 = tpu.bitcast %27 : vector<16x16xf32> -> vector<16x16xi32>
    %c2147483632_i32 = arith.constant 2147483632 : i32
    %30 = vector.broadcast %c2147483632_i32 : i32 to vector<16x16xi32>
    %31 = arith.andi %29, %30 : vector<16x16xi32>
    %32 = arith.ori %31, %28 : vector<16x16xi32>
    %cst_18 = arith.constant dense<0.000000e+00> : vector<16x64xf32>
    %33 = tpu.matmul %3, %7, %cst_18 {dimension_numbers = #tpu.dot_dimension_numbers<[1], [0], [0], [1], [0, 0, 1, 1], [], []>} : vector<16x3xf32>, vector<3x64xf32>, vector<16x64xf32> -> vector<16x64xf32>
    %34 = arith.truncf %33 : vector<16x64xf32> to vector<16x64xbf16>
    %cst_19 = arith.constant dense<0.000000e+00> : vector<16x64xf32>
    %35 = tpu.matmul %6, %8, %cst_19 {dimension_numbers = #tpu.dot_dimension_numbers<[1], [0], [0], [1], [0, 0, 1, 1], [], []>} : vector<16x3xf32>, vector<3x64xf32>, vector<16x64xf32> -> vector<16x64xf32>
    %36 = vector.broadcast %9 : vector<1x64xf32> to vector<16x64xf32>
    %37 = arith.addf %35, %36 : vector<16x64xf32>
    %38 = tpu.concatenate %37, %37 in 0 : vector<16x64xf32>, vector<16x64xf32> -> vector<32x64xf32>
    %cst_20 = arith.constant dense<2147483647> : vector<16xi32>
    %39 = vector.multi_reduction <minsi>, %32, %cst_20 [1] : vector<16x16xi32> to vector<16xi32>
    %40 = vector.shape_cast %39 : vector<16xi32> to vector<16x1xi32>
    %41 = vector.broadcast %40 : vector<16x1xi32> to vector<16x16xi32>
    %42 = arith.cmpi eq, %32, %41 : vector<16x16xi32>
    %43 = arith.extui %42 : vector<16x16xi1> to vector<16x16xi32>
    %44 = arith.sitofp %43 : vector<16x16xi32> to vector<16x16xf32>
    %45 = arith.truncf %44 : vector<16x16xf32> to vector<16x16xbf16>
    %c2147483647_i32 = arith.constant 2147483647 : i32
    %46 = vector.broadcast %c2147483647_i32 : i32 to vector<16x16xi32>
    %47 = arith.select %42, %46, %32 : vector<16x16xi1>, vector<16x16xi32>
    %cst_21 = arith.constant dense<2147483647> : vector<16xi32>
    %48 = vector.multi_reduction <minsi>, %47, %cst_21 [1] : vector<16x16xi32> to vector<16xi32>
    %49 = vector.shape_cast %48 : vector<16xi32> to vector<16x1xi32>
    %50 = vector.broadcast %49 : vector<16x1xi32> to vector<16x16xi32>
    %51 = arith.cmpi eq, %47, %50 : vector<16x16xi32>
    %52 = arith.extui %51 : vector<16x16xi1> to vector<16x16xi32>
    %53 = arith.sitofp %52 : vector<16x16xi32> to vector<16x16xf32>
    %54 = arith.truncf %53 : vector<16x16xf32> to vector<16x16xbf16>
    %c2147483647_i32_22 = arith.constant 2147483647 : i32
    %55 = vector.broadcast %c2147483647_i32_22 : i32 to vector<16x16xi32>
    %56 = arith.select %51, %55, %47 : vector<16x16xi1>, vector<16x16xi32>
    %57 = tpu.concatenate %45, %54 in 0 : vector<16x16xbf16>, vector<16x16xbf16> -> vector<32x16xbf16>
    %cst_23 = arith.constant dense<0.000000e+00> : vector<32x64xf32>
    %58 = tpu.matmul %57, %34, %cst_23 {dimension_numbers = #tpu.dot_dimension_numbers<[1], [0], [0], [1], [0, 0, 1, 1], [], []>} : vector<32x16xbf16>, vector<16x64xbf16>, vector<32x64xf32> -> vector<32x64xf32>
    %59 = arith.addf %58, %38 : vector<32x64xf32>
    %cst_24 = arith.constant 0.000000e+00 : f32
    %60 = vector.broadcast %cst_24 : f32 to vector<32x64xf32>
    %61 = arith.cmpf ogt, %59, %60 : vector<32x64xf32>
    %cst_25 = arith.constant 2.000000e-01 : f32
    %62 = vector.broadcast %cst_25 : f32 to vector<32x64xf32>
    %63 = arith.mulf %62, %59 : vector<32x64xf32>
    %64 = arith.select %61, %59, %63 : vector<32x64xi1>, vector<32x64xf32>
    %65 = arith.truncf %64 : vector<32x64xf32> to vector<32x64xbf16>
    %cst_26 = arith.constant dense<0.000000e+00> : vector<32x128xf32>
    %66 = tpu.matmul %65, %10, %cst_26 {dimension_numbers = #tpu.dot_dimension_numbers<[1], [0], [0], [1], [0, 0, 1, 1], [], []>} : vector<32x64xbf16>, vector<64x128xbf16>, vector<32x128xf32> -> vector<32x128xf32>
    %67 = vector.broadcast %11 : vector<1x128xf32> to vector<32x128xf32>
    %68 = arith.addf %66, %67 : vector<32x128xf32>
    %cst_27 = arith.constant 0.000000e+00 : f32
    %69 = vector.broadcast %cst_27 : f32 to vector<32x128xf32>
    %70 = arith.cmpf ogt, %68, %69 : vector<32x128xf32>
    %cst_28 = arith.constant 2.000000e-01 : f32
    %71 = vector.broadcast %cst_28 : f32 to vector<32x128xf32>
    %72 = arith.mulf %71, %68 : vector<32x128xf32>
    %73 = arith.select %70, %68, %72 : vector<32x128xi1>, vector<32x128xf32>
    %74 = vector.extract_strided_slice %73 {offsets = [0, 0], sizes = [16, 128], strides = [1, 1]} : vector<32x128xf32> to vector<16x128xf32>
    %75 = vector.extract_strided_slice %73 {offsets = [16, 0], sizes = [16, 128], strides = [1, 1]} : vector<32x128xf32> to vector<16x128xf32>
    %76 = arith.maximumf %74, %75 : vector<16x128xf32>
    %cst_29 = arith.constant dense<2147483647> : vector<16xi32>
    %77 = vector.multi_reduction <minsi>, %56, %cst_29 [1] : vector<16x16xi32> to vector<16xi32>
    %78 = vector.shape_cast %77 : vector<16xi32> to vector<16x1xi32>
    %79 = vector.broadcast %78 : vector<16x1xi32> to vector<16x16xi32>
    %80 = arith.cmpi eq, %56, %79 : vector<16x16xi32>
    %81 = arith.extui %80 : vector<16x16xi1> to vector<16x16xi32>
    %82 = arith.sitofp %81 : vector<16x16xi32> to vector<16x16xf32>
    %83 = arith.truncf %82 : vector<16x16xf32> to vector<16x16xbf16>
    %c2147483647_i32_30 = arith.constant 2147483647 : i32
    %84 = vector.broadcast %c2147483647_i32_30 : i32 to vector<16x16xi32>
    %85 = arith.select %80, %84, %56 : vector<16x16xi1>, vector<16x16xi32>
    %cst_31 = arith.constant dense<2147483647> : vector<16xi32>
    %86 = vector.multi_reduction <minsi>, %85, %cst_31 [1] : vector<16x16xi32> to vector<16xi32>
    %87 = vector.shape_cast %86 : vector<16xi32> to vector<16x1xi32>
    %88 = vector.broadcast %87 : vector<16x1xi32> to vector<16x16xi32>
    %89 = arith.cmpi eq, %85, %88 : vector<16x16xi32>
    %90 = arith.extui %89 : vector<16x16xi1> to vector<16x16xi32>
    %91 = arith.sitofp %90 : vector<16x16xi32> to vector<16x16xf32>
    %92 = arith.truncf %91 : vector<16x16xf32> to vector<16x16xbf16>
    %93 = tpu.concatenate %83, %92 in 0 : vector<16x16xbf16>, vector<16x16xbf16> -> vector<32x16xbf16>
    %cst_32 = arith.constant dense<0.000000e+00> : vector<32x64xf32>
    %94 = tpu.matmul %93, %34, %cst_32 {dimension_numbers = #tpu.dot_dimension_numbers<[1], [0], [0], [1], [0, 0, 1, 1], [], []>} : vector<32x16xbf16>, vector<16x64xbf16>, vector<32x64xf32> -> vector<32x64xf32>
    %95 = arith.addf %94, %38 : vector<32x64xf32>
    %cst_33 = arith.constant 0.000000e+00 : f32
    %96 = vector.broadcast %cst_33 : f32 to vector<32x64xf32>
    %97 = arith.cmpf ogt, %95, %96 : vector<32x64xf32>
    %cst_34 = arith.constant 2.000000e-01 : f32
    %98 = vector.broadcast %cst_34 : f32 to vector<32x64xf32>
    %99 = arith.mulf %98, %95 : vector<32x64xf32>
    %100 = arith.select %97, %95, %99 : vector<32x64xi1>, vector<32x64xf32>
    %101 = arith.truncf %100 : vector<32x64xf32> to vector<32x64xbf16>
    %cst_35 = arith.constant dense<0.000000e+00> : vector<32x128xf32>
    %102 = tpu.matmul %101, %10, %cst_35 {dimension_numbers = #tpu.dot_dimension_numbers<[1], [0], [0], [1], [0, 0, 1, 1], [], []>} : vector<32x64xbf16>, vector<64x128xbf16>, vector<32x128xf32> -> vector<32x128xf32>
    %103 = vector.broadcast %11 : vector<1x128xf32> to vector<32x128xf32>
    %104 = arith.addf %102, %103 : vector<32x128xf32>
    %cst_36 = arith.constant 0.000000e+00 : f32
    %105 = vector.broadcast %cst_36 : f32 to vector<32x128xf32>
    %106 = arith.cmpf ogt, %104, %105 : vector<32x128xf32>
    %cst_37 = arith.constant 2.000000e-01 : f32
    %107 = vector.broadcast %cst_37 : f32 to vector<32x128xf32>
    %108 = arith.mulf %107, %104 : vector<32x128xf32>
    %109 = arith.select %106, %104, %108 : vector<32x128xi1>, vector<32x128xf32>
    %110 = vector.extract_strided_slice %109 {offsets = [0, 0], sizes = [16, 128], strides = [1, 1]} : vector<32x128xf32> to vector<16x128xf32>
    %111 = vector.extract_strided_slice %109 {offsets = [16, 0], sizes = [16, 128], strides = [1, 1]} : vector<32x128xf32> to vector<16x128xf32>
    %112 = arith.maximumf %110, %111 : vector<16x128xf32>
    %113 = arith.maximumf %76, %112 : vector<16x128xf32>
    %114 = arith.truncf %113 : vector<16x128xf32> to vector<16x128xbf16>
    %c0_38 = arith.constant 0 : index
    %c0_39 = arith.constant 0 : index
    %115 = vector.load %arg8[%c0_38, %c0_39] : memref<128x1024xbf16, #tpu.memory_space<vmem>>, vector<128x1024xbf16>
    %cst_40 = arith.constant dense<0.000000e+00> : vector<16x1024xf32>
    %116 = tpu.matmul %114, %115, %cst_40 {dimension_numbers = #tpu.dot_dimension_numbers<[1], [0], [0], [1], [0, 0, 1, 1], [], []>} : vector<16x128xbf16>, vector<128x1024xbf16>, vector<16x1024xf32> -> vector<16x1024xf32>
    %c0_41 = arith.constant 0 : index
    %c0_42 = arith.constant 0 : index
    %117 = vector.load %arg9[%c0_41, %c0_42] : memref<1x1024xf32, #tpu.memory_space<vmem>>, vector<1x1024xf32>
    %118 = vector.broadcast %117 : vector<1x1024xf32> to vector<16x1024xf32>
    %119 = arith.addf %116, %118 : vector<16x1024xf32>
    %cst_43 = arith.constant 0.000000e+00 : f32
    %120 = vector.broadcast %cst_43 : f32 to vector<16x1024xf32>
    %121 = arith.cmpf ogt, %119, %120 : vector<16x1024xf32>
    %cst_44 = arith.constant 2.000000e-01 : f32
    %122 = vector.broadcast %cst_44 : f32 to vector<16x1024xf32>
    %123 = arith.mulf %122, %119 : vector<16x1024xf32>
    %124 = arith.select %121, %119, %123 : vector<16x1024xi1>, vector<16x1024xf32>
    %cst_45 = arith.constant dense<0xFF800000> : vector<1024xf32>
    %125 = vector.multi_reduction <maximumf>, %124, %cst_45 [0] : vector<16x1024xf32> to vector<1024xf32>
    %126 = vector.shape_cast %125 : vector<1024xf32> to vector<1x1024xf32>
    %c0_i32 = arith.constant 0 : i32
    %127 = arith.cmpi eq, %arg1, %c0_i32 : i32
    %128 = arith.extui %127 : i1 to i32
    %c0_i32_46 = arith.constant 0 : i32
    %129 = arith.cmpi ne, %128, %c0_i32_46 : i32
    scf.if %129 {
      %c0_49 = arith.constant 0 : index
      %c0_50 = arith.constant 0 : index
      %c0_51 = arith.constant 0 : index
      %133 = vector.load %arg10[%c0_49, %c0_50, %c0_51] : memref<1x1x1024xf32, #tpu.memory_space<vmem>>, vector<1x1x1024xf32>
      %134 = vector.shape_cast %133 : vector<1x1x1024xf32> to vector<1x1024xf32>
      %135 = vector.shape_cast %126 : vector<1x1024xf32> to vector<1x1x1024xf32>
      tpu.vector_store %arg10[%c0_49, %c0_50, %c0_51], %135 {strides = array<i32>} : memref<1x1x1024xf32, #tpu.memory_space<vmem>>, vector<1x1x1024xf32>,
    } else {
    }
    %c0_i32_47 = arith.constant 0 : i32
    %130 = arith.cmpi sgt, %arg1, %c0_i32_47 : i32
    %131 = arith.extui %130 : i1 to i32
    %c0_i32_48 = arith.constant 0 : i32
    %132 = arith.cmpi ne, %131, %c0_i32_48 : i32
    scf.if %132 {
      %c0_49 = arith.constant 0 : index
      %c0_50 = arith.constant 0 : index
      %c0_51 = arith.constant 0 : index
      %133 = vector.load %arg10[%c0_49, %c0_50, %c0_51] : memref<1x1x1024xf32, #tpu.memory_space<vmem>>, vector<1x1x1024xf32>
      %134 = vector.shape_cast %133 : vector<1x1x1024xf32> to vector<1x1024xf32>
      %135 = arith.maximumf %134, %126 : vector<1x1024xf32>
      %c0_52 = arith.constant 0 : index
      %c0_53 = arith.constant 0 : index
      %c0_54 = arith.constant 0 : index
      %136 = vector.load %arg10[%c0_52, %c0_53, %c0_54] : memref<1x1x1024xf32, #tpu.memory_space<vmem>>, vector<1x1x1024xf32>
      %137 = vector.shape_cast %136 : vector<1x1x1024xf32> to vector<1x1024xf32>
      %138 = vector.shape_cast %135 : vector<1x1024xf32> to vector<1x1x1024xf32>
      tpu.vector_store %arg10[%c0_52, %c0_53, %c0_54], %138 {strides = array<i32>} : memref<1x1x1024xf32, #tpu.memory_space<vmem>>, vector<1x1x1024xf32>,
    } else {
    }
    return
  }
  func.func @transform_0(%arg0: i32, %arg1: i32) -> (i32, i32, i32) {
    %c0_i32 = arith.constant 0 : i32
    %c0_i32_0 = arith.constant 0 : i32
    %c0_i32_1 = arith.constant 0 : i32
    return %arg0, %c0_i32, %c0_i32_0 : i32, i32, i32
  }
  func.func @transform_1(%arg0: i32, %arg1: i32) -> (i32, i32) {
    %c0_i32 = arith.constant 0 : i32
    %c0_i32_0 = arith.constant 0 : i32
    %c0_i32_1 = arith.constant 0 : i32
    return %c0_i32, %c0_i32_0 : i32, i32
  }
  func.func @transform_2(%arg0: i32, %arg1: i32) -> (i32, i32) {
    %c0_i32 = arith.constant 0 : i32
    %c0_i32_0 = arith.constant 0 : i32
    %c0_i32_1 = arith.constant 0 : i32
    return %c0_i32, %c0_i32_0 : i32, i32
  }
  func.func @transform_3(%arg0: i32, %arg1: i32) -> (i32, i32) {
    %c0_i32 = arith.constant 0 : i32
    %c0_i32_0 = arith.constant 0 : i32
    %c0_i32_1 = arith.constant 0 : i32
    return %c0_i32, %c0_i32_0 : i32, i32
  }
  func.func @transform_4(%arg0: i32, %arg1: i32) -> (i32, i32) {
    %c0_i32 = arith.constant 0 : i32
    %c0_i32_0 = arith.constant 0 : i32
    %c0_i32_1 = arith.constant 0 : i32
    return %c0_i32, %c0_i32_0 : i32, i32
  }
  func.func @transform_5(%arg0: i32, %arg1: i32) -> (i32, i32) {
    %c0_i32 = arith.constant 0 : i32
    %c0_i32_0 = arith.constant 0 : i32
    %c0_i32_1 = arith.constant 0 : i32
    return %c0_i32, %c0_i32_0 : i32, i32
  }
  func.func @transform_6(%arg0: i32, %arg1: i32) -> (i32, i32) {
    %c0_i32 = arith.constant 0 : i32
    %c0_i32_0 = arith.constant 0 : i32
    %c0_i32_1 = arith.constant 0 : i32
    return %c0_i32, %c0_i32_0 : i32, i32
  }
  func.func @transform_7(%arg0: i32, %arg1: i32) -> (i32, i32) {
    %c0_i32 = arith.constant 0 : i32
    %c0_i32_0 = arith.constant 0 : i32
    %c0_i32_1 = arith.constant 0 : i32
    return %c0_i32, %c0_i32_0 : i32, i32
  }
  func.func @transform_8(%arg0: i32, %arg1: i32) -> (i32, i32, i32) {
    %c0_i32 = arith.constant 0 : i32
    %c0_i32_0 = arith.constant 0 : i32
    %c0_i32_1 = arith.constant 0 : i32
    return %arg0, %c0_i32, %c0_i32_0 : i32, i32, i32
  }
}

</mosaic_0001>

<bundles_post_ra>
// kernel: tpu_custom_call.1
= control target key start
LH: loop header
LB: loop body
LE: loop exit
PB: predicated region body
PF: predicated region fallthrough
CT: control target
= control target key end

     0   :  { %s2680_s0 = inlined_call_operand.vmem [shape: f32[2,16,3], index: 0, kind: input, shape index: {}]   ;;  %s2681_s1 = inlined_call_operand.hbm [shape: f32[3,64], index: 1, kind: input, shape index: {}]   ;;  %s2682_s2 = inlined_call_operand.hbm [shape: f32[3,64], index: 2, kind: input, shape index: {}]   ;;  %s2683_s3 = inlined_call_operand.vmem [shape: f32[1,64], index: 3, kind: input, shape index: {}]   ;;  %s2684_s4 = inlined_call_operand.vmem [shape: bf16[64,128], index: 4, kind: input, shape index: {}]   ;;  %s2685_s5 = inlined_call_operand.vmem [shape: f32[1,128], index: 5, kind: input, shape index: {}]   ;;  %s2686_s6 = inlined_call_operand.hbm [shape: bf16[128,1024], index: 6, kind: input, shape index: {}]   ;;  %s2687_s7 = inlined_call_operand.vmem [shape: f32[1,1024], index: 7, kind: input, shape index: {}]   ;;  %s2688_s8 = inlined_call_operand.hbm [shape: f32[2,1,1024], index: 8, kind: output, shape index: {}]  }
   0x1   :  { %2692 = sst [smem:[#allocation16_spill]] %s2682_s2 }
   0x2   :  { %13 = vsyncpa [#allocation3], 0 }
   0x3   :  { %14 = vsyncpa [#allocation6], 0 }
   0x4   :  { %15 = vsyncpa [#allocation4], 0 }
   0x5   :  { %17 = vsyncpa [#allocation4 + $0x1], 0  ;;  %s2416_s27 = smov 0   ;;  %s2418_s28 = smov 0  }
   0x6   :  { %s2420_s29 = smov 0   ;;  %s2422_s30 = smov 0  }
   0x7   :  { %s2424_s9 = smov 0   ;;  %s2426_s10 = smov 0  }
   0x8 LB: > { %2693 = sst [smem:[#allocation12_spill]] %s2351_s29  ;;  %s1711_s11 = sadd.s32 4294967295, %s2363_s10   ;;  %s2363_s10 = sphi %s2426_s10, %s23_s10   ;;  %s2359_s9 = sphi %s2424_s9, %s2706_s9   ;;  %s2355_s30 = sphi %s2422_s30, %s2705_s30   ;;  %s2351_s29 = sphi %s2420_s29, %s2704_s29   ;;  %s2347_s28 = sphi %s2418_s28, %s2708_s28   ;;  %s2343_s27 = sphi %s2416_s27, %s2707_s27  }
   0x9   : > { %2694 = sst [smem:[#allocation13_spill]] %s2359_s9  ;;  %s1712_s12 = sadd.s32 4294967294, %s2363_s10  }
   0xa   : > { %s35_s13 = sadd.s32 1, %s2359_s9  ;;  %s215_s14 = sadd.s32 1, %s2351_s29 }
   0xb   : > { %p37_p0 = scmp.ge.s32.totalorder %s35_s13, 2  ;;  %p225_p1 = scmp.ne.s32.totalorder %s2351_s29, %s2347_s28 }
   0xc   : > { %p226_p2 = scmp.eq.s32.totalorder %s1711_s11, 1  ;;  %p231_p3 = scmp.ne.s32.totalorder %s2347_s28, %s2343_s27 }
   0xd   : > { %s2710_s13 = smov (%p37_p0, %s35_s13), 0  ;;  %p232_p5 = scmp.eq.s32.totalorder %s1712_s12, 1 }
   0xe   : > { %2695 = sst [smem:[#allocation14_spill]] %s2710_s13  ;;  %p2456_p4 = por %p226_p2, %p225_p1 }
   0xf   : > { %s212_s16 = ssub.s32 %s2359_s9, %s2710_s13  ;;  %p1713_p6 = scmp.ge.s32.totalorder %s2363_s10, 1 }
  0x10   : > { %p213_p7 = scmp.eq.s32.totalorder %s212_s16, 0  ;;  %p2463_p8 = por %p232_p5, %p231_p3 }
  0x11   : > { %p239_p9 = scmp.lt.s32.totalorder %s2363_s10, 3  ;;  %p2475_p11 = scmp.eq.s32.totalorder %s1711_s11, 0 }
  0x12   : > { %s2469_s18 = scalar_select %p213_p7, %s2351_s29, %s215_s14  }
  0x13   : > { %p2471_p10 = pnand %p1713_p6, %p239_p9  ;;  %s2701_s2 = sld [smem:[#allocation16_spill]] }
  0x14   : > { %2698 = sst [smem:[#allocation15_spill]] %s2469_s18  ;;  %s2365_s24 = smov [#allocation5]  }
  0x15   : > { %p2110_p12 = pneg %p2471_p10  ;;  %s265_s25 = sshll.u32 %s2365_s24, 4  ;;  %s266_s25 = int_to_ptr.vmem [resolvable:$true] %s265_s25 }
  0x16   : > { %s251_s14 = sshll.u32 %s2681_s1, 4  ;;  %s283_s22 = sshll.u32 %s2686_s6, 4  ;;  %s252_s14 = int_to_ptr.hbm [resolvable:$true] %s251_s14  ;;  %s284_s22 = int_to_ptr.hbm [resolvable:$true] %s283_s22 }
  0x17   : > { %p2486_p13 = pnand %p2475_p11, %p2110_p12  ;;  %s2366_s24 = smov [#allocation2]  }
  0x18   : > { %s2367_s13 = smov [#allocation7]   ;;  %s2368_s18 = smov 512  }
  0x19   : > { %s263_s23 = sshll.u32 %s2701_s2, 4  ;;  %s253_s2 = sshll.u32 %s2366_s24, 4  ;;  %s264_s23 = int_to_ptr.hbm [resolvable:$true] %s263_s23  ;;  %s254_s2 = int_to_ptr.vmem [resolvable:$true] %s253_s2 }
  0x1a   : > { %2116 = dma.hbm_to_vmem [thread:$0]  (!%p2486_p13), %s264_s23, 64, %s266_s25, [#allocation6]  }
  0x1b   : > { %2113 = dma.hbm_to_vmem [thread:$0]  (!%p2486_p13), %s252_s14, 64, %s254_s2, [#allocation3]  }
  0x1c   : > { %s285_s9 = sshll.u32 %s2367_s13, 4  ;;  %s2369_s29 = smov 32   ;;  %s286_s9 = int_to_ptr.vmem [resolvable:$true] %s285_s9 }
  0x1d   : > { %2119 = dma.hbm_to_vmem [thread:$0]  (!%p2486_p13), %s284_s22, 8192, %s286_s9, [#allocation6], %s2368_s18, %s2368_s18, %s2369_s29  }
  0x1e   : > { %312 = sbr.rel (%p2471_p10) target bundleno = 1792 (0x700), region = 52 }
  0x23   : > { %2330 = dma.done.wait (%p2475_p11), [#allocation3], 64  }
  0x24   : > { %2332 = vsyncadd (%p2475_p11), [#allocation3], 4294967232 }
  0x25   : > { %2334 = dma.done.wait (%p2475_p11), [#allocation6], 8256  }
  0x26   : > { %2336 = vsyncadd (%p2475_p11), [#allocation6], 4294959040  ;;  %p357_p0 = scmp.lt.s32.totalorder %s2355_s30, 1  ;;  %vm383_vm0 = vcmask 23552   ;;  %v369_v8 = vld [vmem:[#allocation2] sm:$0x7]  ;;  %v474_v19 = vlaneseq }
  0x27   : > { %vm482_vm1 = vcmask 1042432   ;;  %vm539_vm2 = vcmask 130048   ;;  %v370_v46 = vld [vmem:[#allocation5] sm:$0x7]  ;;  %v2370_v57 = vmov 0.0   ;;  %vm696_vm11 = vcmask 523264  }
  0x28   : > { %s358_s2 = scalar_select %p357_p0, %s2355_s30, 1  ;;  %1729 = vmatpush.msk.msra.mxu1 %vm482_vm1, %v369_v8  ;;  %v475_v24 = vand.u32 127, %v474_v19  ;;  %1732 = vmatpush.msk.msra.mxu2 %vm482_vm1, %v370_v46 }
  0x29   : > { %s354_s9 = sand.u32 1, %s2347_s28   ;;  %s2297_s22 = scalar_lea.hbm %s2688_s8, 16 }
  0x2a   : > { %s2027_s29 = sshll.u32 %s358_s2, 4  ;;  %s2637_s13 = sshll.u32 %s354_s9, 3 }
  0x2b   : > { %s361_s18 = scalar_lea.vmem %s2680_s0, %s2027_s29  ;;  %s1596_s11 = scalar_lea.sflag [#allocation4], %s354_s9 }
  0x2c   : > { %v2517_v0 = vld [vmem:[%s361_s18] sm:$0xff]  ;;  %v2519_v1 = vld [vmem:[%s361_s18 + $0x8] sm:$0xff]  ;;  %s2024_s18 = sshll.u32 %s2355_s30, 3  ;;  %s356_s30 = scalar_lea.vmem [#allocation8], %s2637_s13 }
  0x2d   : > { %v390_v2 = vmul.f32 %v2517_v0, %v2517_v0  ;;  %1725 = vmatpush.xpose.msk.msra.mxu0 %vm383_vm0, %v2519_v1  ;;  %v391_v4 = vmul.f32 %v2519_v1, %v2519_v1  ;;  %1730 = vmatmul.msk.f32.vlgmr.msra.gmra.mxu1 %vm383_vm0, %v2517_v0  ;;  %s1606_s23 = scalar_lea.hbm %s2688_s8, %s2024_s18  ;;  %s1608_s25 = sshll.u32 %s356_s30, 4  ;;  %s1609_s25 = int_to_ptr.vmem [resolvable:$true] %s1608_s25 }
  0x2e   : > { %1733 = vmatmul.msk.f32.vlgmr.msra.gmra.mxu2 %vm383_vm0, %v2517_v0  ;;  %s1610_s26 = sshll.u32 %s1606_s23, 4  ;;  %s1611_s26 = int_to_ptr.hbm [resolvable:$true] %s1610_s26 }
  0x2f   : > { %v392_v3 = vsel %vm383_vm0, %v390_v2, 0.0  ;;  %v395_v5 = vsel %vm383_vm0, %v391_v4, 0.0  ;;  %s2291_s12 = sshra.s32 %s1611_s26, 4  ;;  %s2292_s12 = int_to_ptr.hbm [resolvable:$true] %s2291_s12 }
  0x30   : > { %393 = vadd.xlane.f32.xlu0 %v392_v3  ;;  %385 = vadd.xlane.f32.xlu1 %v392_v3  ;;  %s2293_s14 = scalar_lea.hbm %s2292_s12, 8  ;;  %p2298_p5 = scmp.lt.s32.totalorder %s2292_s12, %s2688_s8 }
  0x31   : > { %1726 = vmatpush.xpose.msk.msra.mxu0 %vm383_vm0, %v2517_v0  ;;  %p2294_p1 = scmp.ne.s32.totalorder %s2292_s12, %s2293_s14  ;;  %p2299_p6 = scmp.lt.s32.totalorder %s2297_s22, %s2293_s14 }
  0x33   : > { %p2295_p2 = pnand %p2294_p1, %p2456_p4  ;;  %p2300_p7 = por %p2299_p6, %p2298_p5 }
  0x34   : > { %1727 = vmatmul.msk.f32.vlgmr.msra.gmra.mxu0 %vm383_vm0, %v2517_v0 }
  0x35   : > { %1731 = vmatmul.msk.f32.gmra.mxu1 %vm383_vm0, %v2519_v1  ;;  %p2296_p3 = pneg %p2295_p2 }
  0x36   : > { %1734 = vmatmul.msk.f32.gmra.mxu2 %vm383_vm0, %v2519_v1 }
  0x37   : > { %p2301_p9 = pnand %p2300_p7, %p2296_p3 }
  0x38   : > { %396 = vadd.xlane.f32.xlu0 %v395_v5  ;;  %388 = vadd.xlane.f32.xlu1 %v395_v5 }
  0x3c   : > { %1728 = vmatmul.msk.f32.gmra.mxu0 %vm383_vm0, %v2519_v1 }
  0xa3   : > { %v394_v6 = vpop.xlane.xlu0 %393  ;;  %v386_v10 = vpop.xlane.xlu1 %385 }
  0xa4   : > { %433 = vxpose.xlu2.b32.start [1/2] (short) (narrow) %v394_v6, 8 }
  0xaa   : > { %v503_v43 = vpop.f32.mrf.mxu1 }
  0xab   : > { %v397_v7 = vpop.xlane.xlu0 %396  ;;  %v389_v13 = vpop.xlane.xlu1 %388 }
  0xac   : > { %434 = vxpose.xlu2.b32.end [2/2] (short) (narrow) %v397_v7, 8 }
  0xb1   : > { %v427_v9 = vpop.f32.mrf.mxu0 }
  0xb2   : > { %v468_v16 = vmul.f32 2.0, %v427_v9  ;;  %v506_v44 = vpop.f32.mrf.mxu1  ;;  %v2031_v9 = vld [vmem:[%s2684_s4 + $0x18] sm:$0xff] }
  0xb3   : > { %v509_v45 = vpack.c.bf16 %v506_v44, %v503_v43  ;;  %707 = vmatpush.bf16.msrb.mxu1 %v2031_v9  ;;  %873 = vmatpush.bf16.msrb.mxu0 %v2031_v9 }
  0xb5   : > { %643 = vmatpush.bf16.msra.mxu3 %v509_v45  ;;  %837 = vmatpush.bf16.msrb.mxu2 %v509_v45 }
  0xb9   : > { %v430_v11 = vpop.f32.mrf.mxu0 }
  0xba   : > { %v469_v15 = vmul.f32 2.0, %v430_v11  ;;  %v2029_v11 = vld [vmem:[%s2684_s4 + $0x8] sm:$0xff] }
 0x13d   : > { %v449_v12 = vpop.trf.xlu2 }
 0x13e   : > { %v465_v14 = vperm.slane %v449_v12, 0 }
 0x140   : > { %v466_v17 = vadd.f32 %v465_v14, %v386_v10  ;;  %v467_v18 = vadd.f32 %v465_v14, %v389_v13  ;;  %v2030_v10 = vld [vmem:[%s2684_s4 + $0x10] sm:$0xff]  ;;  %v2028_v14 = vld [vmem:[%s2684_s4] sm:$0xff] }
 0x141   : > { %708 = vmatpush.bf16.msrb.mxu1 %v2030_v10  ;;  %874 = vmatpush.bf16.msrb.mxu0 %v2030_v10 }
 0x142   : > { %v470_v20 = vsub.f32 %v466_v17, %v468_v16  ;;  %v471_v21 = vsub.f32 %v467_v18, %v469_v15 }
 0x144   : > { %v472_v22 = vmax.f32 %v470_v20, 0.0  ;;  %v473_v23 = vmax.f32 %v471_v21, 0.0  ;;  %v533_v21 = vpop.f32.mrf.mxu2 }
 0x145   : > { %709 = vmatpush.bf16.msrb.mxu1 %v2029_v11  ;;  %875 = vmatpush.bf16.msrb.mxu0 %v2029_v11 }
 0x146   : > { %v478_v25 = vand.u32 2147483632, %v472_v22  ;;  %v479_v26 = vand.u32 2147483632, %v473_v23  ;;  %v2185_v22 = vld [vmem:[%s2683_s3] ss:$0 sm:$0xff] }
 0x148   : > { %v481_v27 = vor.u32 %v479_v26, %v475_v24  ;;  %v480_v28 = vor.u32 %v478_v25, %v475_v24  ;;  %v2573_v24 = vadd.f32 %v2185_v22, %v533_v21 }
 0x149   : > { %710 = vmatpush.bf16.msrb.mxu1 %v2028_v14  ;;  %876 = vmatpush.bf16.msrb.mxu0 %v2028_v14 }
 0x14a   : > { %v555_v29 = vsel %vm539_vm2, %v481_v27, 2147483647  ;;  %v540_v30 = vsel %vm539_vm2, %v480_v28, 2147483647 }
 0x14b   : > { %v557_v31 = vshra.s32 %v555_v29, 16  ;;  %v542_v32 = vshra.s32 %v540_v30, 16  ;;  %v556_v35 = vand.u32 65535, %v555_v29  ;;  %v541_v36 = vand.u32 65535, %v540_v30 }
 0x14c   : > { %v536_v25 = vpop.f32.mrf.mxu2 }
 0x14d   : > { %v559_v33 = vcvt.s32.f32 %v557_v31  ;;  %v544_v34 = vcvt.s32.f32 %v542_v32  ;;  %v558_v39 = vcvt.s32.f32 %v556_v35  ;;  %v543_v40 = vcvt.s32.f32 %v541_v36 }
 0x14f   : > { %560 = vmin.xlane.f32.xlu1 %v559_v33  ;;  %545 = vmin.xlane.f32.xlu0 %v544_v34 }
 0x1c2   : > { %v561_v37 = vpop.xlane.xlu1 %560  ;;  %v546_v38 = vpop.xlane.xlu0 %545 }
 0x1c3   : > { %vm562_vm3 = vcmp.eq.f32.partialorder %v559_v33, %v561_v37  ;;  %vm547_vm4 = vcmp.eq.f32.partialorder %v544_v34, %v546_v38  ;;  %v567_v47 = vcvt.f32.s32 %v561_v37  ;;  %v552_v48 = vcvt.f32.s32 %v546_v38 }
 0x1c4   : > { %v563_v41 = vsel %vm562_vm3, %v558_v39, inf  ;;  %v548_v42 = vsel %vm547_vm4, %v543_v40, inf }
 0x1c5   : > { %564 = vmin.xlane.f32.xlu0 %v563_v41  ;;  %549 = vmin.xlane.f32.xlu2 %v548_v42  ;;  %v568_v51 = vshll.u32 %v567_v47, 16  ;;  %v553_v52 = vshll.u32 %v552_v48, 16 }
 0x238   : > { %v565_v49 = vpop.xlane.xlu0 %564  ;;  %v550_v50 = vpop.xlane.xlu2 %549 }
 0x239   : > { %v566_v53 = vcvt.f32.s32 %v565_v49  ;;  %v551_v54 = vcvt.f32.s32 %v550_v50 }
 0x23b   : > { %v569_v55 = vadd.s32 %v568_v51, %v566_v53  ;;  %v554_v56 = vadd.s32 %v553_v52, %v551_v54 }
 0x23d   : > { %vm571_vm5 = vcmp.eq.s32.totalorder %v481_v27, %v569_v55  ;;  %vm570_vm6 = vcmp.eq.s32.totalorder %v480_v28, %v554_v56 }
 0x23e   : > { %v1736_v58 = vsel %vm571_vm5, 1.0, %v2370_v57  ;;  %v1735_v59 = vsel %vm570_vm6, 1.0, %v2370_v57  ;;  %v2549_v60 = vsel %vm570_vm6, 2147483647, %v480_v28  ;;  %v2551_v61 = vsel %vm571_vm5, 2147483647, %v481_v27 }
 0x23f   : > { %v577_v62 = vpack.c.bf16 %v1736_v58, %v1736_v58  ;;  %v576_v63 = vpack.c.bf16 %v1735_v59, %v1735_v59  ;;  %v595_v0 = vsel %vm539_vm2, %v2551_v61, 2147483647  ;;  %v580_v1 = vsel %vm539_vm2, %v2549_v60, 2147483647 }
 0x240   : > { %v597_v2 = vshra.s32 %v595_v0, 16  ;;  %v582_v3 = vshra.s32 %v580_v1, 16  ;;  %v596_v12 = vand.u32 65535, %v595_v0  ;;  %v581_v13 = vand.u32 65535, %v580_v1 }
 0x241   : > { %v622_v4 = vunpack.c.l.b16 %v576_v63  ;;  %v623_v5 = vunpack.c.l.b16 %v577_v62  ;;  %v2576_v27 = vadd.f32 %v2185_v22, %v536_v25 }
 0x242   : > { %v599_v6 = vcvt.s32.f32 %v597_v2  ;;  %v584_v7 = vcvt.s32.f32 %v582_v3  ;;  %v598_v17 = vcvt.s32.f32 %v596_v12  ;;  %v583_v18 = vcvt.s32.f32 %v581_v13 }
 0x243   : > { %v624_v8 = vpack.c.b16 %v623_v5, %v622_v4 }
 0x244   : > { %600 = vmin.xlane.f32.xlu0 %v599_v6  ;;  %585 = vmin.xlane.f32.xlu1 %v584_v7 }
 0x245   : > { %1739 = vmatmul.msk.bf16.vlgmr.msra.gmra.mxu3 %vm539_vm2, %v624_v8 }
 0x2b7   : > { %v601_v15 = vpop.xlane.xlu0 %600  ;;  %v586_v16 = vpop.xlane.xlu1 %585 }
 0x2b8   : > { %vm602_vm7 = vcmp.eq.f32.partialorder %v599_v6, %v601_v15  ;;  %vm587_vm8 = vcmp.eq.f32.partialorder %v584_v7, %v586_v16  ;;  %v607_v35 = vcvt.f32.s32 %v601_v15  ;;  %v592_v36 = vcvt.f32.s32 %v586_v16 }
 0x2b9   : > { %v603_v19 = vsel %vm602_vm7, %v598_v17, inf  ;;  %v588_v20 = vsel %vm587_vm8, %v583_v18, inf }
 0x2ba   : > { %604 = vmin.xlane.f32.xlu0 %v603_v19  ;;  %589 = vmin.xlane.f32.xlu1 %v588_v20  ;;  %v608_v39 = vshll.u32 %v607_v35, 16  ;;  %v593_v40 = vshll.u32 %v592_v36, 16 }
 0x2c8   : > { %v645_v23 = vpop.f32.mrf.mxu3 }
 0x2c9   : > { %v646_v26 = vadd.f32 %v645_v23, %v2573_v24 }
 0x2cb   : > { %v659_v29 = vmul.f32 0.2, %v646_v26  ;;  %vm655_vm9 = vcmp.gt.f32.partialorder %v646_v26, 0.0 }
 0x2cd   : > { %v663_v32 = vsel %vm655_vm9, %v646_v26, %v659_v29 }
 0x2d0   : > { %v647_v28 = vpop.f32.mrf.mxu3 }
 0x2d1   : > { %v648_v30 = vadd.f32 %v647_v28, %v2576_v27 }
 0x2d3   : > { %vm656_vm10 = vcmp.gt.f32.partialorder %v648_v30, 0.0  ;;  %v660_v31 = vmul.f32 0.2, %v648_v30 }
 0x2d5   : > { %v664_v33 = vsel %vm656_vm10, %v648_v30, %v660_v31 }
 0x2d6   : > { %v667_v34 = vpack.c.bf16 %v664_v33, %v663_v32 }
 0x2d8   : > { %1757 = vmatmul.msk.bf16.vlgmr.msrb.gmra.mxu1 %vm696_vm11, %v667_v34 }
 0x32d   : > { %v605_v37 = vpop.xlane.xlu0 %604  ;;  %v590_v38 = vpop.xlane.xlu1 %589 }
 0x32e   : > { %v606_v41 = vcvt.f32.s32 %v605_v37  ;;  %v591_v42 = vcvt.f32.s32 %v590_v38 }
 0x330   : > { %v609_v43 = vadd.s32 %v608_v39, %v606_v41  ;;  %v594_v44 = vadd.s32 %v593_v40, %v591_v42 }
 0x332   : > { %vm611_vm12 = vcmp.eq.s32.totalorder %v2551_v61, %v609_v43  ;;  %vm610_vm13 = vcmp.eq.s32.totalorder %v2549_v60, %v594_v44 }
 0x333   : > { %v1738_v45 = vsel %vm611_vm12, 1.0, %v2370_v57  ;;  %v1737_v46 = vsel %vm610_vm13, 1.0, %v2370_v57  ;;  %v619_v47 = vsel %vm611_vm12, 2147483647, %v2551_v61  ;;  %v618_v48 = vsel %vm610_vm13, 2147483647, %v2549_v60 }
 0x334   : > { %v617_v49 = vpack.c.bf16 %v1738_v45, %v1738_v45  ;;  %v616_v50 = vpack.c.bf16 %v1737_v46, %v1737_v46  ;;  %v751_v51 = vsel %vm539_vm2, %v619_v47, 2147483647  ;;  %v736_v52 = vsel %vm539_vm2, %v618_v48, 2147483647 }
 0x335   : > { %v753_v53 = vshra.s32 %v751_v51, 16  ;;  %v738_v54 = vshra.s32 %v736_v52, 16  ;;  %v752_v61 = vand.u32 65535, %v751_v51  ;;  %v737_v63 = vand.u32 65535, %v736_v52 }
 0x336   : > { %v627_v55 = vunpack.c.l.b16 %v616_v50  ;;  %v628_v56 = vunpack.c.l.b16 %v617_v49 }
 0x337   : > { %v755_v58 = vcvt.s32.f32 %v753_v53  ;;  %v740_v59 = vcvt.s32.f32 %v738_v54  ;;  %v754_v1 = vcvt.s32.f32 %v752_v61  ;;  %v739_v2 = vcvt.s32.f32 %v737_v63 }
 0x338   : > { %v629_v62 = vpack.c.b16 %v628_v56, %v627_v55 }
 0x339   : > { %756 = vmin.xlane.f32.xlu0 %v755_v58  ;;  %741 = vmin.xlane.f32.xlu1 %v740_v59 }
 0x33a   : > { %1740 = vmatmul.msk.bf16.gmra.mxu3 %vm539_vm2, %v629_v62 }
 0x3ac   : > { %v757_v60 = vpop.xlane.xlu0 %756  ;;  %v742_v0 = vpop.xlane.xlu1 %741 }
 0x3ad   : > { %vm758_vm14 = vcmp.eq.f32.partialorder %v755_v58, %v757_v60  ;;  %vm743_vm15 = vcmp.eq.f32.partialorder %v740_v59, %v742_v0  ;;  %v763_v14 = vcvt.f32.s32 %v757_v60  ;;  %v748_v15 = vcvt.f32.s32 %v742_v0 }
 0x3ae   : > { %v759_v3 = vsel %vm758_vm14, %v754_v1, inf  ;;  %v744_v4 = vsel %vm743_vm15, %v739_v2, inf }
 0x3af   : > { %760 = vmin.xlane.f32.xlu0 %v759_v3  ;;  %745 = vmin.xlane.f32.xlu1 %v744_v4  ;;  %v764_v18 = vshll.u32 %v763_v14, 16  ;;  %v749_v19 = vshll.u32 %v748_v15, 16  ;;  %v2088_v14 = vld [vmem:[#allocation7 + $0x1c4] sm:$0xf] }
 0x3bd   : > { %v650_v5 = vpop.f32.mrf.mxu3 }
 0x3be   : > { %v651_v6 = vadd.f32 %v650_v5, %v2573_v24 }
 0x3c0   : > { %v661_v8 = vmul.f32 0.2, %v651_v6  ;;  %vm657_vm0 = vcmp.gt.f32.partialorder %v651_v6, 0.0 }
 0x3c2   : > { %v665_v11 = vsel %vm657_vm0, %v651_v6, %v661_v8 }
 0x3c5   : > { %v652_v7 = vpop.f32.mrf.mxu3 }
 0x3c6   : > { %v653_v9 = vadd.f32 %v652_v7, %v2576_v27 }
 0x3c8   : > { %vm658_vm1 = vcmp.gt.f32.partialorder %v653_v9, 0.0  ;;  %v662_v10 = vmul.f32 0.2, %v653_v9 }
 0x3ca   : > { %v666_v12 = vsel %vm658_vm1, %v653_v9, %v662_v10 }
 0x3cb   : > { %v668_v13 = vpack.c.bf16 %v666_v12, %v665_v11  ;;  %v1993_v12 = vld [vmem:[#allocation7 + $0x1c0] sm:$0xf] }
 0x3cd   : > { %1758 = vmatmul.msk.bf16.gmra.mxu1 %vm696_vm11, %v668_v13  ;;  %v2092_v13 = vld [vmem:[#allocation7 + $0x1dc] sm:$0xf0] }
 0x3ce   : > { %v1994_v15 = vor.u32 %v2092_v13, %v1993_v12  ;;  %v2048_v12 = vld [vmem:[#allocation7 + $0x84] sm:$0xf] }
 0x3d0   : > { %1307 = vmatpush.bf16.msrb.mxu3 %v1994_v15  ;;  %v1841_v15 = vld [vmem:[#allocation7 + $0x88] sm:$0xf] }
 0x422   : > { %v761_v16 = vpop.xlane.xlu0 %760  ;;  %v746_v17 = vpop.xlane.xlu1 %745 }
 0x423   : > { %v762_v20 = vcvt.f32.s32 %v761_v16  ;;  %v747_v21 = vcvt.f32.s32 %v746_v17  ;;  %v1995_v16 = vld [vmem:[#allocation7 + $0x1e0] sm:$0xf0]  ;;  %v2001_v17 = vld [vmem:[#allocation7 + $0x1c8] sm:$0xf] }
 0x425   : > { %v765_v22 = vadd.s32 %v764_v18, %v762_v20  ;;  %v750_v23 = vadd.s32 %v749_v19, %v747_v21  ;;  %v2093_v18 = vld [vmem:[#allocation7 + $0x1e4] sm:$0xf0]  ;;  %v1998_v19 = vor.u32 %v2088_v14, %v1995_v16  ;;  %v2089_v21 = vld [vmem:[#allocation7 + $0x1cc] sm:$0xf]  ;;  %v1835_v14 = vld [vmem:[#allocation7 + $0xa0] sm:$0xf0] }
 0x426   : > { %v2002_v20 = vor.u32 %v2093_v18, %v2001_v17  ;;  %v2053_v16 = vld [vmem:[#allocation7 + $0xa4] sm:$0xf0]  ;;  %v2049_v17 = vld [vmem:[#allocation7 + $0x8c] sm:$0xf] }
 0x427   : > { %vm767_vm3 = vcmp.eq.s32.totalorder %v619_v47, %v765_v22  ;;  %vm766_vm4 = vcmp.eq.s32.totalorder %v618_v48, %v750_v23  ;;  %v2003_v22 = vld [vmem:[#allocation7 + $0x1e8] sm:$0xf0]  ;;  %v1961_v23 = vld [vmem:[#allocation7 + $0x180] sm:$0xf]  ;;  %1321 = vmatpush.bf16.msra.mxu1 %v1998_v19 }
 0x428   : > { %v1760_v25 = vsel %vm767_vm3, 1.0, %v2370_v57  ;;  %v1759_v26 = vsel %vm766_vm4, 1.0, %v2370_v57  ;;  %v775_v28 = vsel %vm767_vm3, 2147483647, %v619_v47  ;;  %v774_v29 = vsel %vm766_vm4, 2147483647, %v618_v48  ;;  %1335 = vmatpush.bf16.msra.mxu2 %v2002_v20 }
 0x429   : > { %v773_v30 = vpack.c.bf16 %v1760_v25, %v1760_v25  ;;  %v772_v31 = vpack.c.bf16 %v1759_v26, %v1759_v26  ;;  %v791_v32 = vsel %vm539_vm2, %v775_v28, 2147483647  ;;  %v776_v33 = vsel %vm539_vm2, %v774_v29, 2147483647  ;;  %v2084_v25 = vld [vmem:[#allocation7 + $0x19c] sm:$0xf0] }
 0x42a   : > { %v793_v34 = vshra.s32 %v791_v32, 16  ;;  %v778_v35 = vshra.s32 %v776_v33, 16  ;;  %v792_v41 = vand.u32 65535, %v791_v32  ;;  %v777_v42 = vand.u32 65535, %v776_v33  ;;  %v2080_v26 = vld [vmem:[#allocation7 + $0x184] sm:$0xf] }
 0x42b   : > { %v817_v36 = vunpack.c.l.b16 %v773_v30  ;;  %v816_v37 = vunpack.c.l.b16 %v772_v31  ;;  %v1969_v31 = vld [vmem:[#allocation7 + $0x188] sm:$0xf]  ;;  %v2081_v33 = vld [vmem:[#allocation7 + $0x18c] sm:$0xf]  ;;  %v1838_v20 = vor.u32 %v2048_v12, %v1835_v14  ;;  %v2083_v12 = vld [vmem:[#allocation7 + $0x19c] sm:$0xf] }
 0x42c   : > { %v795_v38 = vcvt.s32.f32 %v793_v34  ;;  %v780_v39 = vcvt.s32.f32 %v778_v35  ;;  %v794_v45 = vcvt.s32.f32 %v792_v41  ;;  %v779_v46 = vcvt.s32.f32 %v777_v42  ;;  %v2085_v32 = vld [vmem:[#allocation7 + $0x1a4] sm:$0xf0]  ;;  %v1971_v35 = vld [vmem:[#allocation7 + $0x1a8] sm:$0xf0] }
 0x42d   : > { %v818_v40 = vpack.c.b16 %v817_v36, %v816_v37  ;;  %v1970_v34 = vor.u32 %v2085_v32, %v1969_v31  ;;  %v1929_v36 = vld [vmem:[#allocation7 + $0x140] sm:$0xf]  ;;  %v1937_v41 = vld [vmem:[#allocation7 + $0x148] sm:$0xf]  ;;  %v1843_v18 = vld [vmem:[#allocation7 + $0xa8] sm:$0xf0] }
 0x42e   : > { %796 = vmin.xlane.f32.xlu0 %v795_v38  ;;  %781 = vmin.xlane.f32.xlu1 %v780_v39  ;;  %v2076_v37 = vld [vmem:[#allocation7 + $0x15c] sm:$0xf0] }
 0x42f   : > { %1763 = vmatmul.msk.bf16.vlgmr.msrb.gmra.mxu2 %vm539_vm2, %v818_v40  ;;  %v1931_v40 = vld [vmem:[#allocation7 + $0x160] sm:$0xf0]  ;;  %v1930_v42 = vor.u32 %v2076_v37, %v1929_v36  ;;  %v1801_v32 = vld [vmem:[#allocation7 + $0x40] sm:$0xf]  ;;  %v1809_v36 = vld [vmem:[#allocation7 + $0x48] sm:$0xf] }
 0x430   : > { %1336 = vmatpush.bf16.msra.mxu2 %v1970_v34  ;;  %v2045_v37 = vld [vmem:[#allocation7 + $0x64] sm:$0xf0] }
 0x4a1   : > { %v797_v43 = vpop.xlane.xlu0 %796  ;;  %v782_v44 = vpop.xlane.xlu1 %781 }
 0x4a2   : > { %vm798_vm5 = vcmp.eq.f32.partialorder %v795_v38, %v797_v43  ;;  %vm783_vm6 = vcmp.eq.f32.partialorder %v780_v39, %v782_v44  ;;  %v803_v59 = vcvt.f32.s32 %v797_v43  ;;  %v788_v62 = vcvt.f32.s32 %v782_v44  ;;  %v2072_v39 = vld [vmem:[#allocation7 + $0x144] sm:$0xf]  ;;  %v2077_v43 = vld [vmem:[#allocation7 + $0x164] sm:$0xf0]  ;;  %v2073_v44 = vld [vmem:[#allocation7 + $0x14c] sm:$0xf] }
 0x4a3   : > { %v799_v47 = vsel %vm798_vm5, %v794_v45, inf  ;;  %v784_v48 = vsel %vm783_vm6, %v779_v46, inf  ;;  %v1974_v38 = vor.u32 %v2081_v33, %v1971_v35  ;;  %v1939_v45 = vld [vmem:[#allocation7 + $0x168] sm:$0xf0]  ;;  %v1934_v46 = vor.u32 %v2072_v39, %v1931_v40  ;;  %v2040_v33 = vld [vmem:[#allocation7 + $0x44] sm:$0xf] }
 0x4a4   : > { %800 = vmin.xlane.f32.xlu0 %v799_v47  ;;  %785 = vmin.xlane.f32.xlu1 %v784_v48  ;;  %v804_v60 = vshll.u32 %v803_v59, 16  ;;  %v789_v0 = vshll.u32 %v788_v62, 16  ;;  %v1938_v47 = vor.u32 %v2077_v43, %v1937_v41  ;;  %v1897_v48 = vld [vmem:[#allocation7 + $0x100] sm:$0xf]  ;;  %v1803_v35 = vld [vmem:[#allocation7 + $0x60] sm:$0xf0]  ;;  %v1810_v39 = vor.u32 %v2045_v37, %v1809_v36 }
 0x4a5   : > { %v2041_v40 = vld [vmem:[#allocation7 + $0x4c] sm:$0xf]  ;;  %v2036_v43 = vld [vmem:[#allocation7 + $0x1c] sm:$0xf0]  ;;  %v2071_v36 = vld [vmem:[#allocation7 + $0x134] sm:$0xf0] }
 0x4a6   : > { %1337 = vmatpush.bf16.msra.mxu2 %v1938_v47  ;;  %v1777_v47 = vld [vmem:[#allocation7 + $0x8] sm:$0xf] }
 0x4b2   : > { %v839_v49 = vpop.f32.mrf.mxu2 }
 0x4b3   : > { %v840_v50 = vadd.f32 %v839_v49, %v2573_v24  ;;  %v2068_v49 = vld [vmem:[#allocation7 + $0x11c] sm:$0xf0] }
 0x4b5   : > { %v853_v52 = vmul.f32 0.2, %v840_v50  ;;  %vm849_vm7 = vcmp.gt.f32.partialorder %v840_v50, 0.0 }
 0x4b7   : > { %v857_v55 = vsel %vm849_vm7, %v840_v50, %v853_v52  ;;  %v2064_v50 = vld [vmem:[#allocation7 + $0x104] sm:$0xf] }
 0x4b8   : > { %v1899_v52 = vld [vmem:[#allocation7 + $0x120] sm:$0xf0] }
 0x4b9   : > { %v1902_v59 = vor.u32 %v2064_v50, %v1899_v52  ;;  %v1779_v52 = vld [vmem:[#allocation7 + $0x28] sm:$0xf0] }
 0x4ba   : > { %v841_v51 = vpop.f32.mrf.mxu2 }
 0x4bb   : > { %v842_v53 = vadd.f32 %v841_v51, %v2576_v27  ;;  %v1942_v51 = vor.u32 %v2073_v44, %v1939_v45  ;;  %v2032_v44 = vld [vmem:[#allocation7 + $0x4] sm:$0xf] }
 0x4bd   : > { %vm850_vm8 = vcmp.gt.f32.partialorder %v842_v53, 0.0  ;;  %v854_v54 = vmul.f32 0.2, %v842_v53 }
 0x4bf   : > { %v858_v56 = vsel %vm850_vm8, %v842_v53, %v854_v54  ;;  %v1905_v53 = vld [vmem:[#allocation7 + $0x108] sm:$0xf] }
 0x4c0   : > { %v861_v58 = vpack.c.bf16 %v858_v56, %v857_v55  ;;  %v2069_v54 = vld [vmem:[#allocation7 + $0x124] sm:$0xf0]  ;;  %v2065_v55 = vld [vmem:[#allocation7 + $0x10c] sm:$0xf] }
 0x4c1   : > { %v1907_v56 = vld [vmem:[#allocation7 + $0x128] sm:$0xf0]  ;;  %v1906_v62 = vor.u32 %v2069_v54, %v1905_v53  ;;  %v2009_v53 = vld [vmem:[#allocation7 + $0x1d0] sm:$0xf]  ;;  %v2606_v54 = vpop.f32.mrf.mxu1 }
 0x4c2   : > { %1765 = vmatmul.msk.bf16.vlgmr.msrb.gmra.mxu0 %vm696_vm11, %v861_v58  ;;  %v1898_v58 = vor.u32 %v2068_v49, %v1897_v48  ;;  %v2037_v48 = vld [vmem:[#allocation7 + $0x24] sm:$0xf0] }
 0x4c3   : > { %1338 = vmatpush.bf16.msra.mxu2 %v1906_v62  ;;  %v1778_v50 = vor.u32 %v2037_v48, %v1777_v47  ;;  %v2063_v47 = vld [vmem:[#allocation7 + $0xf4] sm:$0xf0] }
 0x517   : > { %v801_v61 = vpop.xlane.xlu0 %800  ;;  %v786_v63 = vpop.xlane.xlu1 %785 }
 0x518   : > { %v802_v1 = vcvt.f32.s32 %v801_v61  ;;  %v787_v2 = vcvt.f32.s32 %v786_v63  ;;  %v1865_v61 = vld [vmem:[#allocation7 + $0xc0] sm:$0xf] }
 0x519   : > { %v2060_v63 = vld [vmem:[#allocation7 + $0xdc] sm:$0xf0] }
 0x51a   : > { %v805_v3 = vadd.s32 %v804_v60, %v802_v1  ;;  %v790_v4 = vadd.s32 %v789_v0, %v787_v2  ;;  %v2056_v60 = vld [vmem:[#allocation7 + $0xc4] sm:$0xf]  ;;  %v1910_v0 = vor.u32 %v2065_v55, %v1907_v56  ;;  %v1873_v2 = vld [vmem:[#allocation7 + $0xc8] sm:$0xf]  ;;  %v2094_v56 = vld [vmem:[#allocation7 + $0x1ec] sm:$0xf0] }
 0x51b   : > { %v1867_v1 = vld [vmem:[#allocation7 + $0xe0] sm:$0xf0]  ;;  %v2010_v62 = vor.u32 %v2094_v56, %v2009_v53  ;;  %v2054_v56 = vld [vmem:[#allocation7 + $0xac] sm:$0xf0] }
 0x51c   : > { %vm807_vm9 = vcmp.eq.s32.totalorder %v775_v28, %v805_v3  ;;  %vm806_vm10 = vcmp.eq.s32.totalorder %v774_v29, %v790_v4  ;;  %v1963_v28 = vld [vmem:[#allocation7 + $0x1a0] sm:$0xf0]  ;;  %v1962_v29 = vor.u32 %v2084_v25, %v1961_v23  ;;  %v2061_v3 = vld [vmem:[#allocation7 + $0xe4] sm:$0xf0]  ;;  %v2057_v4 = vld [vmem:[#allocation7 + $0xcc] sm:$0xf]  ;;  %v1846_v23 = vor.u32 %v2049_v17, %v1843_v18 }
 0x51d   : > { %v1762_v5 = vsel %vm807_vm9, 1.0, %v2370_v57  ;;  %v1761_v6 = vsel %vm806_vm10, 1.0, %v2370_v57  ;;  %v2006_v57 = vor.u32 %v2089_v21, %v2003_v22  ;;  %v1966_v30 = vor.u32 %v2080_v26, %v1963_v28  ;;  %v2078_v17 = vld [vmem:[#allocation7 + $0x16c] sm:$0xf0]  ;;  %v2074_v18 = vld [vmem:[#allocation7 + $0x154] sm:$0xf] }
 0x51e   : > { %v813_v7 = vpack.c.bf16 %v1762_v5, %v1762_v5  ;;  %v812_v8 = vpack.c.bf16 %v1761_v6, %v1761_v6  ;;  %1308 = vmatpush.bf16.msrb.mxu3 %v1962_v29  ;;  %v1875_v5 = vld [vmem:[#allocation7 + $0xe8] sm:$0xf0]  ;;  %v1866_v6 = vor.u32 %v2060_v63, %v1865_v61  ;;  %v1842_v21 = vor.u32 %v2053_v16, %v1841_v15  ;;  %v2017_v63 = vld [vmem:[#allocation7 + $0x1d8] sm:$0xf]  ;;  %v1945_v16 = vld [vmem:[#allocation7 + $0x150] sm:$0xf] }
 0x51f   : > { %1349 = vmatpush.bf16.msra.mxu0 %v2006_v57  ;;  %1322 = vmatpush.bf16.msra.mxu1 %v1966_v30  ;;  %v1878_v13 = vor.u32 %v2057_v4, %v1875_v5  ;;  %v2086_v4 = vld [vmem:[#allocation7 + $0x1ac] sm:$0xf0] }
 0x520   : > { %v822_v9 = vunpack.c.l.b16 %v813_v7  ;;  %v821_v10 = vunpack.c.l.b16 %v812_v8  ;;  %v1870_v8 = vor.u32 %v2056_v60, %v1867_v1  ;;  %v2095_v60 = vld [vmem:[#allocation7 + $0x1f4] sm:$0xf0] }
 0x521   : > { %v2018_v1 = vor.u32 %v2095_v60, %v2017_v63  ;;  %v1857_v63 = vld [vmem:[#allocation7 + $0x98] sm:$0xf] }
 0x522   : > { %v823_v11 = vpack.c.b16 %v822_v9, %v821_v10  ;;  %1309 = vmatpush.bf16.msrb.mxu3 %v1930_v42  ;;  %v1874_v9 = vor.u32 %v2061_v3, %v1873_v2  ;;  %v1833_v10 = vld [vmem:[#allocation7 + $0x80] sm:$0xf]  ;;  %v2019_v2 = vld [vmem:[#allocation7 + $0x1f8] sm:$0xf0]  ;;  %v1977_v3 = vld [vmem:[#allocation7 + $0x190] sm:$0xf] }
 0x523   : > { %1350 = vmatpush.bf16.msra.mxu0 %v1974_v38  ;;  %1323 = vmatpush.bf16.msra.mxu1 %v1934_v46  ;;  %v1806_v38 = vor.u32 %v2040_v33, %v1803_v35  ;;  %v1769_v42 = vld [vmem:[#allocation7] sm:$0xf]  ;;  %v1771_v46 = vld [vmem:[#allocation7 + $0x20] sm:$0xf0]  ;;  %v1921_v35 = vld [vmem:[#allocation7 + $0x118] sm:$0xf] }
 0x524   : > { %1764 = vmatmul.msk.bf16.gmra.mxu2 %vm539_vm2, %v823_v11  ;;  %v2052_v11 = vld [vmem:[#allocation7 + $0x9c] sm:$0xf0]  ;;  %v1770_v45 = vor.u32 %v2036_v43, %v1769_v42  ;;  %v1774_v49 = vor.u32 %v2032_v44, %v1771_v46  ;;  %v2062_v42 = vld [vmem:[#allocation7 + $0xec] sm:$0xf0]  ;;  %v2058_v43 = vld [vmem:[#allocation7 + $0xd4] sm:$0xf] }
 0x525   : > { %v1834_v19 = vor.u32 %v2052_v11, %v1833_v10  ;;  %1339 = vmatpush.bf16.msra.mxu2 %v1874_v9  ;;  %v1985_v9 = vld [vmem:[#allocation7 + $0x198] sm:$0xf] }
 0x526   : > { %1310 = vmatpush.bf16.msrb.mxu3 %v1898_v58  ;;  %v2090_v58 = vld [vmem:[#allocation7 + $0x1d4] sm:$0xf]  ;;  %v2087_v11 = vld [vmem:[#allocation7 + $0x1b4] sm:$0xf0] }
 0x527   : > { %1351 = vmatpush.bf16.msra.mxu0 %v1942_v51  ;;  %1324 = vmatpush.bf16.msra.mxu1 %v1902_v59  ;;  %v2033_v51 = vld [vmem:[#allocation7 + $0xc] sm:$0xf]  ;;  %v2011_v59 = vld [vmem:[#allocation7 + $0x1f0] sm:$0xf0]  ;;  %v1986_v14 = vor.u32 %v2087_v11, %v1985_v9  ;;  %v1889_v46 = vld [vmem:[#allocation7 + $0xd8] sm:$0xf] }
 0x528   : > { %v1782_v55 = vor.u32 %v2033_v51, %v1779_v52  ;;  %v2014_v61 = vor.u32 %v2090_v58, %v2011_v59  ;;  %v1891_v51 = vld [vmem:[#allocation7 + $0xf8] sm:$0xf0]  ;;  %v1849_v52 = vld [vmem:[#allocation7 + $0x90] sm:$0xf]  ;;  %v2050_v58 = vld [vmem:[#allocation7 + $0x94] sm:$0xf] }
 0x529   : > { %1340 = vmatpush.bf16.msra.mxu2 %v1842_v21  ;;  %v1953_v21 = vld [vmem:[#allocation7 + $0x158] sm:$0xf]  ;;  %v1851_v59 = vld [vmem:[#allocation7 + $0xb0] sm:$0xf0]  ;;  %v2043_v11 = vld [vmem:[#allocation7 + $0x5c] sm:$0xf] }
 0x52a   : > { %1311 = vmatpush.bf16.msrb.mxu3 %v1866_v6  ;;  %v1978_v6 = vor.u32 %v2086_v4, %v1977_v3  ;;  %v2055_v60 = vld [vmem:[#allocation7 + $0xb4] sm:$0xf0]  ;;  %v1859_v3 = vld [vmem:[#allocation7 + $0xb8] sm:$0xf0]  ;;  %v1817_v4 = vld [vmem:[#allocation7 + $0x50] sm:$0xf] }
 0x52b   : > { %1352 = vmatpush.bf16.msra.mxu0 %v1910_v0  ;;  %1325 = vmatpush.bf16.msra.mxu1 %v1870_v8  ;;  %v2091_v0 = vld [vmem:[#allocation7 + $0x1dc] sm:$0xf]  ;;  %v1979_v8 = vld [vmem:[#allocation7 + $0x1b0] sm:$0xf0]  ;;  %v1825_v9 = vld [vmem:[#allocation7 + $0x58] sm:$0xf] }
 0x52c   : > { %v2022_v5 = vor.u32 %v2091_v0, %v2019_v2  ;;  %v2051_v0 = vld [vmem:[#allocation7 + $0x9c] sm:$0xf]  ;;  %v1858_v2 = vor.u32 %v2055_v60, %v1857_v63 }
 0x52d   : > { %1341 = vmatpush.bf16.msra.mxu2 %v1810_v39  ;;  %v2067_v39 = vld [vmem:[#allocation7 + $0x11c] sm:$0xf] }
 0x52e   : > { %1312 = vmatpush.bf16.msrb.mxu3 %v1834_v19  ;;  %v1946_v19 = vor.u32 %v2078_v17, %v1945_v16  ;;  %v2038_v17 = vld [vmem:[#allocation7 + $0x2c] sm:$0xf0] }
 0x52f   : > { %1353 = vmatpush.bf16.msra.mxu0 %v1878_v13  ;;  %1326 = vmatpush.bf16.msra.mxu1 %v1838_v20  ;;  %v1987_v13 = vld [vmem:[#allocation7 + $0x1b8] sm:$0xf0]  ;;  %v1947_v20 = vld [vmem:[#allocation7 + $0x170] sm:$0xf0] }
 0x530   : > { %v1990_v15 = vor.u32 %v2083_v12, %v1987_v13  ;;  %v1827_v12 = vld [vmem:[#allocation7 + $0x78] sm:$0xf0] }
 0x531   : > { %1342 = vmatpush.bf16.msra.mxu2 %v1778_v50  ;;  %v2059_v50 = vld [vmem:[#allocation7 + $0xdc] sm:$0xf] }
 0x533   : > { %1354 = vmatpush.bf16.msra.mxu0 %v1846_v23  ;;  %1327 = vmatpush.bf16.msra.mxu1 %v1806_v38  ;;  %v1950_v23 = vor.u32 %v2074_v18, %v1947_v20  ;;  %v1922_v38 = vor.u32 %v2071_v36, %v1921_v35  ;;  %v2034_v18 = vld [vmem:[#allocation7 + $0x14] sm:$0xf]  ;;  %v1830_v20 = vor.u32 %v2043_v11, %v1827_v12 }
 0x535   : > { %1391 = vmatpush.bf16.msrb.mxu2 %v2018_v1 }
 0x537   : > { %1328 = vmatpush.bf16.msra.mxu1 %v1774_v49  ;;  %v1890_v49 = vor.u32 %v2063_v47, %v1889_v46 }
 0x539   : > { %1392 = vmatpush.bf16.msrb.mxu2 %v1986_v14 }
 0x53b   : > { %1377 = vmatpush.bf16.msrb.mxu1 %v2014_v61  ;;  %v1854_v61 = vor.u32 %v2050_v58, %v1851_v59 }
 0x5a7   : > { %v844_v7 = vpop.f32.mrf.mxu2 }
 0x5a8   : > { %v845_v22 = vadd.f32 %v844_v7, %v2573_v24  ;;  %v2044_v24 = vld [vmem:[#allocation7 + $0x5c] sm:$0xf0]  ;;  %v2082_v7 = vld [vmem:[#allocation7 + $0x194] sm:$0xf] }
 0x5a9   : > { %v1802_v34 = vor.u32 %v2044_v24, %v1801_v32  ;;  %v1982_v10 = vor.u32 %v2082_v7, %v1979_v8  ;;  %v2070_v32 = vld [vmem:[#allocation7 + $0x12c] sm:$0xf0]  ;;  %v2066_v24 = vld [vmem:[#allocation7 + $0x114] sm:$0xf] }
 0x5aa   : > { %v855_v25 = vmul.f32 0.2, %v845_v22  ;;  %vm851_vm2 = vcmp.gt.f32.partialorder %v845_v22, 0.0  ;;  %v2042_v7 = vld [vmem:[#allocation7 + $0x54] sm:$0xf] }
 0x5ab   : > { %1313 = vmatpush.bf16.msrb.mxu3 %v1802_v34  ;;  %1378 = vmatpush.bf16.msrb.mxu1 %v1982_v10  ;;  %v1915_v34 = vld [vmem:[#allocation7 + $0x130] sm:$0xf0]  ;;  %v2047_v10 = vld [vmem:[#allocation7 + $0x74] sm:$0xf0] }
 0x5ac   : > { %v859_v29 = vsel %vm851_vm2, %v845_v22, %v855_v25  ;;  %v2079_v22 = vld [vmem:[#allocation7 + $0x174] sm:$0xf0]  ;;  %v2075_v25 = vld [vmem:[#allocation7 + $0x15c] sm:$0xf]  ;;  %v1918_v37 = vor.u32 %v2066_v24, %v1915_v34  ;;  %v1819_v8 = vld [vmem:[#allocation7 + $0x70] sm:$0xf0]  ;;  %v1826_v16 = vor.u32 %v2047_v10, %v1825_v9 }
 0x5ad   : > { %v1822_v14 = vor.u32 %v2042_v7, %v1819_v8 }
 0x5af   : > { %v846_v57 = vpop.f32.mrf.mxu2  ;;  %1314 = vmatpush.bf16.msrb.mxu3 %v1770_v45  ;;  %1379 = vmatpush.bf16.msrb.mxu1 %v1950_v23  ;;  %v1883_v45 = vld [vmem:[#allocation7 + $0xf0] sm:$0xf0]  ;;  %v2035_v23 = vld [vmem:[#allocation7 + $0x1c] sm:$0xf] }
 0x5b0   : > { %v847_v26 = vadd.f32 %v846_v57, %v2576_v27  ;;  %v1811_v27 = vld [vmem:[#allocation7 + $0x68] sm:$0xf0]  ;;  %v1954_v57 = vor.u32 %v2079_v22, %v1953_v21  ;;  %v1886_v48 = vor.u32 %v2058_v43, %v1883_v45  ;;  %v1793_v21 = vld [vmem:[#allocation7 + $0x18] sm:$0xf] }
 0x5b1   : > { %v1814_v41 = vor.u32 %v2041_v40, %v1811_v27  ;;  %v1923_v40 = vld [vmem:[#allocation7 + $0x138] sm:$0xf0]  ;;  %v2039_v22 = vld [vmem:[#allocation7 + $0x34] sm:$0xf0] }
 0x5b2   : > { %vm852_vm12 = vcmp.gt.f32.partialorder %v847_v26, 0.0  ;;  %v856_v28 = vmul.f32 0.2, %v847_v26  ;;  %1393 = vmatpush.bf16.msrb.mxu2 %v1954_v57  ;;  %v1926_v27 = vor.u32 %v2067_v39, %v1923_v40  ;;  %v1795_v57 = vld [vmem:[#allocation7 + $0x38] sm:$0xf0]  ;;  %v1794_v24 = vor.u32 %v2039_v22, %v1793_v21 }
 0x5b3   : > { %1355 = vmatpush.bf16.msra.mxu0 %v1814_v41  ;;  %1363 = vmatpush.bf16.msra.mxu3 %v2010_v62  ;;  %v1881_v41 = vld [vmem:[#allocation7 + $0xd0] sm:$0xf]  ;;  %v1850_v62 = vor.u32 %v2054_v56, %v1849_v52  ;;  %v1798_v34 = vor.u32 %v2035_v23, %v1795_v57 }
 0x5b4   : > { %v860_v30 = vsel %vm852_vm12, %v847_v26, %v856_v28  ;;  %v1955_v26 = vld [vmem:[#allocation7 + $0x178] sm:$0xf0]  ;;  %1380 = vmatpush.bf16.msrb.mxu1 %v1918_v37  ;;  %v1882_v44 = vor.u32 %v2062_v42, %v1881_v41 }
 0x5b5   : > { %v862_v31 = vpack.c.bf16 %v860_v30, %v859_v29  ;;  %v1958_v28 = vor.u32 %v2075_v25, %v1955_v26  ;;  %v2608_v29 = vpop.f32.mrf.mxu1  ;;  %v2610_v30 = vpop.f32.mrf.mxu0  ;;  %v2186_v25 = vld [vmem:[%s2685_s5] ss:$0 sm:$0xff] }
 0x5b6   : > { %1394 = vmatpush.bf16.msrb.mxu2 %v1922_v38  ;;  %v879_v37 = vadd.f32 %v2186_v25, %v2610_v30  ;;  %v713_v38 = vadd.f32 %v2186_v25, %v2606_v54  ;;  %v715_v39 = vadd.f32 %v2186_v25, %v2608_v29 }
 0x5b7   : > { %1766 = vmatmul.msk.bf16.gmra.mxu0 %vm696_vm11, %v862_v31  ;;  %1364 = vmatpush.bf16.msra.mxu3 %v1978_v6  ;;  %v1913_v31 = vld [vmem:[#allocation7 + $0x110] sm:$0xf]  ;;  %v1862_v6 = vor.u32 %v2051_v0, %v1859_v3  ;;  %v2621_v0 = vld [vmem:[%s2687_s7] sm:$0xff] }
 0x5b8   : > { %1356 = vmatpush.bf16.msra.mxu0 %v1782_v55  ;;  %v1914_v33 = vor.u32 %v2070_v32, %v1913_v31  ;;  %v1894_v55 = vor.u32 %v2059_v50, %v1891_v51  ;;  %1381 = vmatpush.bf16.msrb.mxu1 %v1886_v48  ;;  %v892_v43 = vmul.f32 0.2, %v879_v37  ;;  %vm888_vm15 = vcmp.gt.f32.partialorder %v879_v37, 0.0 }
 0x5b9   : > { %v727_v30 = vmul.f32 0.2, %v715_v39  ;;  %vm722_vm0 = vcmp.gt.f32.partialorder %v713_v38, 0.0  ;;  %vm723_vm1 = vcmp.gt.f32.partialorder %v715_v39, 0.0  ;;  %v974_v3 = vperm.slane %v2621_v0, 3 }
 0x5ba   : > { %1395 = vmatpush.bf16.msrb.mxu2 %v1890_v49  ;;  %v896_v49 = vsel %vm888_vm15, %v879_v37, %v892_v43  ;;  %v971_v8 = vperm.slane %v2621_v0, 0  ;;  %v973_v9 = vperm.slane %v2621_v0, 2  ;;  %v976_v22 = vperm.slane %v2621_v0, 5 }
 0x5bb   : > { %1365 = vmatpush.bf16.msra.mxu3 %v1946_v19  ;;  %v1787_v19 = vld [vmem:[#allocation7 + $0x30] sm:$0xf0]  ;;  %v978_v23 = vperm.slane %v2621_v0, 7 }
 0x5bc   : > { %1405 = vmatpush.bf16.msrb.mxu0 %v2022_v5  ;;  %v2046_v5 = vld [vmem:[#allocation7 + $0x6c] sm:$0xf0]  ;;  %1382 = vmatpush.bf16.msrb.mxu1 %v1854_v61 }
 0x5bd   : > { %v717_v53 = vpop.f32.mrf.mxu1  ;;  %v880_v1 = vpop.f32.mrf.mxu0  ;;  %v1818_v13 = vor.u32 %v2046_v5, %v1817_v4  ;;  %v972_v5 = vperm.slane %v2621_v0, 1 }
 0x5be   : > { %1396 = vmatpush.bf16.msrb.mxu2 %v1858_v2  ;;  %v718_v35 = vadd.f32 %v2186_v25, %v717_v53  ;;  %v881_v40 = vadd.f32 %v2186_v25, %v880_v1  ;;  %v731_v53 = vsel %vm723_vm1, %v715_v39, %v727_v30 }
 0x5bf   : > { %1366 = vmatpush.bf16.msra.mxu3 %v1914_v33 }
 0x5c0   : > { %1406 = vmatpush.bf16.msrb.mxu0 %v1990_v15  ;;  %v1785_v15 = vld [vmem:[#allocation7 + $0x10] sm:$0xf]  ;;  %1383 = vmatpush.bf16.msrb.mxu1 %v1822_v14  ;;  %v728_v41 = vmul.f32 0.2, %v718_v35  ;;  %vm724_vm13 = vcmp.gt.f32.partialorder %v718_v35, 0.0  ;;  %vm889_vm3 = vcmp.gt.f32.partialorder %v881_v40, 0.0 }
 0x5c1   : > { %v1786_v26 = vor.u32 %v2038_v17, %v1785_v15  ;;  %v893_v46 = vmul.f32 0.2, %v881_v40 }
 0x5c2   : > { %1397 = vmatpush.bf16.msrb.mxu2 %v1826_v16  ;;  %v732_v54 = vsel %vm724_vm13, %v718_v35, %v728_v41 }
 0x5c3   : > { %1367 = vmatpush.bf16.msra.mxu3 %v1882_v44  ;;  %v726_v44 = vmul.f32 0.2, %v713_v38 }
 0x5c4   : > { %1407 = vmatpush.bf16.msrb.mxu0 %v1958_v28  ;;  %v1790_v28 = vor.u32 %v2034_v18, %v1787_v19 }
 0x5c5   : > { %v719_v31 = vpop.f32.mrf.mxu1  ;;  %v730_v52 = vsel %vm722_vm0, %v713_v38, %v726_v44 }
 0x5c6   : > { %v720_v36 = vadd.f32 %v2186_v25, %v719_v31  ;;  %1384 = vmatpush.bf16.msrb.mxu1 %v1790_v28  ;;  %1398 = vmatpush.bf16.msrb.mxu2 %v1794_v24  ;;  %v734_v58 = vmax.f32 %v730_v52, %v732_v54  ;;  %v977_v52 = vperm.slane %v2621_v0, 6 }
 0x5c7   : > { %1368 = vmatpush.bf16.msra.mxu3 %v1850_v62 }
 0x5c8   : > { %1408 = vmatpush.bf16.msrb.mxu0 %v1926_v27  ;;  %v729_v42 = vmul.f32 0.2, %v720_v36  ;;  %vm725_vm14 = vcmp.gt.f32.partialorder %v720_v36, 0.0 }
 0x5ca   : > { %v733_v29 = vsel %vm725_vm14, %v720_v36, %v729_v42 }
 0x5cb   : > { %1369 = vmatpush.bf16.msra.mxu3 %v1818_v13  ;;  %v735_v59 = vmax.f32 %v731_v53, %v733_v29 }
 0x5cc   : > { %1409 = vmatpush.bf16.msrb.mxu0 %v1894_v55  ;;  %v897_v55 = vsel %vm889_vm3, %v881_v40, %v893_v46 }
 0x5cf   : > { %1370 = vmatpush.bf16.msra.mxu3 %v1786_v26 }
 0x5d0   : > { %1410 = vmatpush.bf16.msrb.mxu0 %v1862_v6 }
 0x5d4   : > { %1411 = vmatpush.bf16.msrb.mxu0 %v1830_v20 }
 0x5d8   : > { %1412 = vmatpush.bf16.msrb.mxu0 %v1798_v34 }
 0x634   : > { %v883_v32 = vpop.f32.mrf.mxu0 }
 0x635   : > { %v884_v33 = vadd.f32 %v2186_v25, %v883_v32 }
 0x637   : > { %v894_v27 = vmul.f32 0.2, %v884_v33  ;;  %vm890_vm11 = vcmp.gt.f32.partialorder %v884_v33, 0.0 }
 0x639   : > { %v898_v47 = vsel %vm890_vm11, %v884_v33, %v894_v27 }
 0x63a   : > { %v900_v51 = vmax.f32 %v896_v49, %v898_v47 }
 0x63c   : > { %v885_v45 = vpop.f32.mrf.mxu0  ;;  %v902_v61 = vmax.f32 %v734_v58, %v900_v51 }
 0x63d   : > { %v886_v48 = vadd.f32 %v2186_v25, %v885_v45 }
 0x63f   : > { %vm891_vm4 = vcmp.gt.f32.partialorder %v886_v48, 0.0  ;;  %v895_v50 = vmul.f32 0.2, %v886_v48 }
 0x641   : > { %v899_v56 = vsel %vm891_vm4, %v886_v48, %v895_v50  ;;  %v975_v48 = vperm.slane %v2621_v0, 4 }
 0x642   : > { %v901_v62 = vmax.f32 %v897_v55, %v899_v56 }
 0x644   : > { %v903_v63 = vmax.f32 %v735_v59, %v901_v62 }
 0x646   : > { %v904_v60 = vpack.c.bf16 %v903_v63, %v902_v61 }
 0x648   : > { %1315 = vmatmul.bf16.vlgmr.msrb.gmra.mxu3 %v904_v60  ;;  %1329 = vmatmul.bf16.vlgmr.msra.gmra.mxu1 %v904_v60 }
 0x649   : > { %1343 = vmatmul.bf16.vlgmr.msra.gmra.mxu2 %v904_v60  ;;  %1357 = vmatmul.bf16.vlgmr.msra.gmra.mxu0 %v904_v60 }
 0x658   : > { %1371 = vmatmul.bf16.vlgmr.msra.gmra.mxu3 %v904_v60  ;;  %1385 = vmatmul.bf16.vlgmr.msrb.gmra.mxu1 %v904_v60 }
 0x659   : > { %1399 = vmatmul.bf16.vlgmr.msrb.gmra.mxu2 %v904_v60  ;;  %1413 = vmatmul.bf16.vlgmr.msrb.gmra.mxu0 %v904_v60 }
 0x6c5   : > { %v1330_v1 = vpop.f32.mrf.mxu1 }
 0x6c6   : > { %v1358_v2 = vpop.f32.mrf.mxu0  ;;  %v1331_v14 = vadd.f32 %v1330_v1, %v972_v5 }
 0x6c7   : > { %v1359_v6 = vadd.f32 %v1358_v2, %v974_v3 }
 0x6c8   : > { %vm1420_vm8 = vcmp.gt.f32.partialorder %v1331_v14, 0.0  ;;  %v1436_v57 = vmul.f32 0.2, %v1331_v14 }
 0x6c9   : > { %vm1422_vm5 = vcmp.gt.f32.partialorder %v1359_v6, 0.0  ;;  %v1438_v15 = vmul.f32 0.2, %v1359_v6 }
 0x6ca   : > { %v1452_v39 = vsel %vm1420_vm8, %v1331_v14, %v1436_v57  ;;  %vm1548_vm8 = vcmask 1044484  }
 0x6cb   : > { %v1316_v4 = vpop.f32.mrf.mxu3  ;;  %v1454_v25 = vsel %vm1422_vm5, %v1359_v6, %v1438_v15  ;;  %vm1542_vm5 = vcmask 1040384  }
 0x6cc   : > { %v1344_v7 = vpop.f32.mrf.mxu2  ;;  %v1317_v16 = vadd.f32 %v1316_v4, %v971_v8 }
 0x6cd   : > { %v1332_v10 = vpop.f32.mrf.mxu1  ;;  %v1345_v17 = vadd.f32 %v1344_v7, %v973_v9 }
 0x6ce   : > { %v1333_v11 = vadd.f32 %v1332_v10, %v972_v5  ;;  %v1360_v12 = vpop.f32.mrf.mxu0  ;;  %v1435_v31 = vmul.f32 0.2, %v1317_v16  ;;  %vm1419_vm2 = vcmp.gt.f32.partialorder %v1317_v16, 0.0 }
 0x6cf   : > { %v1361_v13 = vadd.f32 %v1360_v12, %v974_v3  ;;  %v1437_v32 = vmul.f32 0.2, %v1345_v17  ;;  %vm1421_vm9 = vcmp.gt.f32.partialorder %v1345_v17, 0.0 }
 0x6d0   : > { %v1444_v19 = vmul.f32 0.2, %v1333_v11  ;;  %vm1428_vm7 = vcmp.gt.f32.partialorder %v1333_v11, 0.0  ;;  %v1451_v44 = vsel %vm1419_vm2, %v1317_v16, %v1435_v31  ;;  %vm1554_vm2 = vcmask 1043456  }
 0x6d1   : > { %vm1430_vm6 = vcmp.gt.f32.partialorder %v1361_v13, 0.0  ;;  %v1446_v18 = vmul.f32 0.2, %v1361_v13  ;;  %v1453_v27 = vsel %vm1421_vm9, %v1345_v17, %v1437_v32  ;;  %vm1550_vm9 = vcmask 1046534  }
 0x6d2   : > { %v1460_v35 = vsel %vm1428_vm7, %v1333_v11, %v1444_v19  ;;  %vm1546_vm7 = vcmask 1041408  }
 0x6d3   : > { %v1462_v20 = vsel %vm1430_vm6, %v1361_v13, %v1446_v18  ;;  %v1318_v21 = vpop.f32.mrf.mxu3  ;;  %v1474_v41 = vmax.f32 %v1452_v39, %v1460_v35  ;;  %vm1544_vm6 = vcmask 1042434  }
 0x6d4   : > { %v1319_v26 = vadd.f32 %v1318_v21, %v971_v8  ;;  %v1346_v28 = vpop.f32.mrf.mxu2  ;;  %v1488_v24 = vmax.f32 %v1454_v25, %v1462_v20 }
 0x6d5   : > { %v1347_v33 = vadd.f32 %v1346_v28, %v973_v9  ;;  %v1386_v34 = vpop.f32.mrf.mxu1  ;;  %v1475_v50 = vrot.slane %v1474_v41, 4 }
 0x6d6   : > { %vm1427_vm10 = vcmp.gt.f32.partialorder %v1319_v26, 0.0  ;;  %v1443_v36 = vmul.f32 0.2, %v1319_v26  ;;  %v1414_v37 = vpop.f32.mrf.mxu0  ;;  %v1489_v42 = vrot.slane %v1488_v24, 4  ;;  %v1387_v30 = vadd.f32 %v1386_v34, %v976_v22 }
 0x6d7   : > { %vm1429_vm12 = vcmp.gt.f32.partialorder %v1347_v33, 0.0  ;;  %v1445_v38 = vmul.f32 0.2, %v1347_v33  ;;  %v1415_v46 = vadd.f32 %v1414_v37, %v978_v23  ;;  %v1476_v60 = vmax.f32 %v1474_v41, %v1475_v50 }
 0x6d8   : > { %v1459_v40 = vsel %vm1427_vm10, %v1319_v26, %v1443_v36  ;;  %v1490_v51 = vmax.f32 %v1488_v24, %v1489_v42  ;;  %v1440_v55 = vmul.f32 0.2, %v1387_v30  ;;  %vm1424_vm11 = vcmp.gt.f32.partialorder %v1387_v30, 0.0 }
 0x6d9   : > { %v1461_v43 = vsel %vm1429_vm12, %v1347_v33, %v1445_v38  ;;  %v1467_v47 = vmax.f32 %v1451_v44, %v1459_v40  ;;  %v1442_v56 = vmul.f32 0.2, %v1415_v46  ;;  %vm1426_vm13 = vcmp.gt.f32.partialorder %v1415_v46, 0.0 }
 0x6da   : > { %v1481_v45 = vmax.f32 %v1453_v27, %v1461_v43  ;;  %v1491_v1 = vrot.slane %v1490_v51, 2  ;;  %v1456_v4 = vsel %vm1424_vm11, %v1387_v30, %v1440_v55  ;;  %v1477_v20 = vrot.slane %v1476_v60, 2 }
 0x6db   : > { %v1372_v54 = vpop.f32.mrf.mxu3  ;;  %v1468_v59 = vrot.slane %v1467_v47, 4  ;;  %v1458_v5 = vsel %vm1426_vm13, %v1415_v46, %v1442_v56  ;;  %vm1552_vm10 = vcmask 1045508  }
 0x6dc   : > { %v1482_v29 = vrot.slane %v1481_v45, 4  ;;  %v1400_v49 = vpop.f32.mrf.mxu2  ;;  %v1373_v62 = vadd.f32 %v1372_v54, %v975_v48  ;;  %v1492_v33 = vmax.f32 %v1490_v51, %v1491_v1  ;;  %v1478_v39 = vmax.f32 %v1476_v60, %v1477_v20 }
 0x6dd   : > { %v1388_v53 = vpop.f32.mrf.mxu1  ;;  %v1401_v2 = vadd.f32 %v1400_v49, %v977_v52  ;;  %v1469_v7 = vmax.f32 %v1467_v47, %v1468_v59 }
 0x6de   : > { %v1416_v58 = vpop.f32.mrf.mxu0  ;;  %v1483_v61 = vmax.f32 %v1481_v45, %v1482_v29  ;;  %v1389_v63 = vadd.f32 %v1388_v53, %v976_v22  ;;  %vm1423_vm15 = vcmp.gt.f32.partialorder %v1373_v62, 0.0  ;;  %v1439_v10 = vmul.f32 0.2, %v1373_v62 }
 0x6df   : > { %v1417_v3 = vadd.f32 %v1416_v58, %v978_v23  ;;  %v1441_v14 = vmul.f32 0.2, %v1401_v2  ;;  %vm1425_vm1 = vcmp.gt.f32.partialorder %v1401_v2, 0.0  ;;  %v1470_v34 = vrot.slane %v1469_v7, 2 }
 0x6e0   : > { %vm1432_vm14 = vcmp.gt.f32.partialorder %v1389_v63, 0.0  ;;  %v1448_v6 = vmul.f32 0.2, %v1389_v63  ;;  %v1484_v9 = vrot.slane %v1483_v61, 2  ;;  %v1455_v57 = vsel %vm1423_vm15, %v1373_v62, %v1439_v10 }
 0x6e1   : > { %vm1434_vm0 = vcmp.gt.f32.partialorder %v1417_v3, 0.0  ;;  %v1450_v0 = vmul.f32 0.2, %v1417_v3  ;;  %v1457_v28 = vsel %vm1425_vm1, %v1401_v2, %v1441_v14  ;;  %v1493_v44 = vrot.slane %v1492_v33, 1 }
 0x6e2   : > { %v1464_v11 = vsel %vm1432_vm14, %v1389_v63, %v1448_v6  ;;  %v1485_v23 = vmax.f32 %v1483_v61, %v1484_v9  ;;  %v1471_v45 = vmax.f32 %v1469_v7, %v1470_v34  ;;  %v1479_v54 = vrot.slane %v1478_v39, 1 }
 0x6e3   : > { %v1374_v8 = vpop.f32.mrf.mxu3  ;;  %v1502_v15 = vmax.f32 %v1456_v4, %v1464_v11  ;;  %v1466_v16 = vsel %vm1434_vm0, %v1417_v3, %v1450_v0 }
 0x6e4   : > { %v1375_v12 = vadd.f32 %v1374_v8, %v975_v48  ;;  %v1402_v13 = vpop.f32.mrf.mxu2  ;;  %v1516_v18 = vmax.f32 %v1458_v5, %v1466_v16  ;;  %v1486_v40 = vrot.slane %v1485_v23, 1  ;;  %v1472_v53 = vrot.slane %v1471_v45, 1 }
 0x6e5   : > { %v1403_v17 = vadd.f32 %v1402_v13, %v977_v52  ;;  %v1503_v21 = vrot.slane %v1502_v15, 4  ;;  %v1494_v52 = vmax.f32 %v1492_v33, %v1493_v44  ;;  %v1480_v59 = vmax.f32 %v1478_v39, %v1479_v54 }
 0x6e6   : > { %vm1431_vm3 = vcmp.gt.f32.partialorder %v1375_v12, 0.0  ;;  %v1447_v19 = vmul.f32 0.2, %v1375_v12  ;;  %v1517_v25 = vrot.slane %v1516_v18, 4  ;;  %v1487_v29 = vmax.f32 %v1485_v23, %v1486_v40 }
 0x6e7   : > { %vm1433_vm4 = vcmp.gt.f32.partialorder %v1403_v17, 0.0  ;;  %v1449_v22 = vmul.f32 0.2, %v1403_v17  ;;  %v1504_v31 = vmax.f32 %v1502_v15, %v1503_v21  ;;  %v1537_v1 = vrot.slane %v1494_v52, 5 }
 0x6e8   : > { %v1463_v26 = vsel %vm1431_vm3, %v1375_v12, %v1447_v19  ;;  %v1518_v35 = vmax.f32 %v1516_v18, %v1517_v25  ;;  %v1536_v62 = vrot.slane %v1487_v29, 6  ;;  %v1473_v2 = vmax.f32 %v1471_v45, %v1472_v53 }
 0x6e9   : > { %v1495_v32 = vmax.f32 %v1455_v57, %v1463_v26  ;;  %v1465_v24 = vsel %vm1433_vm4, %v1403_v17, %v1449_v22  ;;  %v1505_v37 = vrot.slane %v1504_v31, 2  ;;  %v1535_v6 = vrot.slane %v1480_v59, 7 }
 0x6ea   : > { %v1509_v36 = vmax.f32 %v1457_v28, %v1465_v24  ;;  %v1519_v27 = vrot.slane %v1518_v35, 2  ;;  %v1545_v8 = vsel %vm1544_vm6, %v1536_v62, %v1537_v1 }
 0x6eb   : > { %v1496_v38 = vrot.slane %v1495_v32, 4  ;;  %v1506_v42 = vmax.f32 %v1504_v31, %v1505_v37  ;;  %v1543_v10 = vsel %vm1542_vm5, %v1473_v2, %v1535_v6 }
 0x6ec   : > { %v1510_v41 = vrot.slane %v1509_v36, 4  ;;  %v1520_v30 = vmax.f32 %v1518_v35, %v1519_v27  ;;  %v1547_v12 = vsel %vm1546_vm7, %v1543_v10, %v1545_v8 }
 0x6ed   : > { %v1497_v43 = vmax.f32 %v1495_v32, %v1496_v38  ;;  %v1507_v47 = vrot.slane %v1506_v42, 1 }
 0x6ee   : > { %v1511_v46 = vmax.f32 %v1509_v36, %v1510_v41  ;;  %v1521_v49 = vrot.slane %v1520_v30, 1 }
 0x6ef   : > { %v1498_v48 = vrot.slane %v1497_v43, 2  ;;  %v1508_v56 = vmax.f32 %v1506_v42, %v1507_v47 }
 0x6f0   : > { %v1512_v50 = vrot.slane %v1511_v46, 2  ;;  %v1522_v61 = vmax.f32 %v1520_v30, %v1521_v49 }
 0x6f1   : > { %v1499_v51 = vmax.f32 %v1497_v43, %v1498_v48  ;;  %v1539_v4 = vrot.slane %v1508_v56, 3 }
 0x6f2   : > { %v1513_v55 = vmax.f32 %v1511_v46, %v1512_v50  ;;  %v1541_v7 = vrot.slane %v1522_v61, 1 }
 0x6f3   : > { %v1500_v58 = vrot.slane %v1499_v51, 1 }
 0x6f4   : > { %v1514_v63 = vrot.slane %v1513_v55, 1 }
 0x6f5   : > { %v1501_v60 = vmax.f32 %v1499_v51, %v1500_v58 }
 0x6f6   : > { %v1515_v3 = vmax.f32 %v1513_v55, %v1514_v63 }
 0x6f7   : > { %v1538_v5 = vrot.slane %v1501_v60, 4 }
 0x6f8   : > { %v1540_v0 = vrot.slane %v1515_v3, 2 }
 0x6f9   : > { %v1549_v9 = vsel %vm1548_vm8, %v1538_v5, %v1539_v4 }
 0x6fa   : > { %v1551_v11 = vsel %vm1550_vm9, %v1540_v0, %v1541_v7 }
 0x6fb   : > { %v1553_v13 = vsel %vm1552_vm10, %v1549_v9, %v1551_v11 }
 0x6fc   : > { %v1555_v14 = vsel %vm1554_vm2, %v1547_v12, %v1553_v13 }
 0x6fd   : > { %1557 = vst [vmem:[%s356_s30] sm:$0xff] %v1555_v14 }
 0x6fe   : > { %2304 = shalt.err (!%p2301_p9)
}
 0x6ff   : > { %2108 = dma.vmem_to_hbm [thread:$0]  (%p2456_p4), %s1609_s25, 128, %s1611_s26, %s1596_s11  }
 0x700 PF: > { %p2130_p10 = scmp.ge.s32.totalorder %s2363_s10, 2  ;;  %s1622_s29 = sand.u32 1, %s2343_s27  }
 0x701   : > { %s1623_s9 = scalar_lea.sflag [#allocation4], %s1622_s29 }
 0x702   : > { %p2121_p11 = pnand %p2130_p10, %p2463_p8 }
 0x704   : > { %p2122_p12 = pneg %p2121_p11 }
 0x706   : > { %2338 = dma.done.wait (%p2122_p12), %s1623_s9, 128  }
 0x707   : > { %2340 = vsyncadd (%p2122_p12), %s1623_s9, 4294967168  ;;  %s23_s10 = sadd.s32 1, %s2363_s10   ;;  %s2703_s13 = sld [smem:[#allocation12_spill]] }
 0x708   : > { %p20_p13 = scmp.ge.s32.totalorder %s23_s10, 4   ;;  %s2704_s29 = sld [smem:[#allocation15_spill]] }
 0x709   : > { %s2705_s30 = sld [smem:[#allocation13_spill]]  ;;  %s2707_s27 = smov %s2347_s28 }
 0x70a   : > { %s2706_s9 = sld [smem:[#allocation14_spill]]  ;;  %22 = sbr.rel (!%p20_p13) target bundleno = 8 (0x8), region = 109 }
 0x70d   : > { %s2708_s28 = smov %s2703_s13 }
 0x70f   :  { %1629 = vsyncpa [#allocation3], 1 }
 0x710   :  { %1631 = vsyncpa [#allocation3 + $0x1], 1 }
 0x711   :  { %1632 = vsyncpa [#allocation6], 1 }
 0x712   :  { %1633 = vsyncpa [#allocation4], 1 }
 0x713   :  { %1635 = vsyncpa [#allocation4 + $0x1], 1 }

</bundles_post_ra>
